<compile_context>
chip_gen: v6e
topology: v6e:2x2x1
jax: 0.10.0
libtpu: 0.0.40
codegen_flags: <defaults>
</compile_context>

<pallas_src>
import jax
import jax.numpy as jnp
from jax.experimental import pallas as pl
from jax.experimental.pallas import tpu as pltpu


NEG_SLOPE = 0.01        # F.leaky_relu default
BN_EPS = 1e-5
NODES = 8               # reduced_sensors=True -> 8 sensor nodes per graph
LANES = 128             # lane width; all feature dims padded to this
MIN_GRAPHS_PER_STEP = 16   # 128 node rows / step (one MXU tile on v5e)
MAX_GRAPHS_PER_STEP = 64   # 512 node rows / step (caps block-diag adjacency)

# Packed-parameter slab layout: seven full (128,128) zero-padded weight tiles
# followed by one (8,128) bias tile.  All carve slices are 8/128-aligned.
_W1, _W2, _W3, _W4 = 0, 128, 256, 384       # GCN conv1..conv4 (BN folded in 4)
_FW1, _FW2, _FW3 = 512, 640, 768            # fc_block1..3
_BIAS = 896                                  # 7 bias rows (b1..b4,fb1..fb3)
SLAB_ROWS = 904


def _lrelu(v):
    return jnp.where(v > 0, v, NEG_SLOPE * v)


def eeg_gcn_kernel(x_ref, a_ref, slab_ref, out_ref):
    """One grid step: G graphs (GN = G*8 node rows), all lane-dense at 128."""
    a = a_ref[...]                       # [GN, GN] block-diagonal adjacency
    h = x_ref[...]                       # [GN, 128] zero-padded node features

    # --- carve packed parameters (static, 128-aligned, lane-dense) ---------
    w1 = slab_ref[_W1:_W1 + LANES, :]
    w2 = slab_ref[_W2:_W2 + LANES, :]
    w3 = slab_ref[_W3:_W3 + LANES, :]
    w4 = slab_ref[_W4:_W4 + LANES, :]          # eval-mode BatchNorm folded in
    fw1 = slab_ref[_FW1:_FW1 + LANES, :]
    fw2 = slab_ref[_FW2:_FW2 + LANES, :]
    fw3 = slab_ref[_FW3:_FW3 + LANES, :]
    biases = slab_ref[_BIAS:_BIAS + 8, :]      # [8, 128], one aligned load
    b1, b2, b3, b4 = biases[0:1], biases[1:2], biases[2:3], biases[3:4]
    fb1, fb2, fb3 = biases[4:5], biases[5:6], biases[6:7]

    def gcn(v, w, b):
        # GCNConv(normalize=False): A @ (X @ W) + b — two full-width MXU
        # pushes.  Zero-padded lanes/rows are algebraically inert.
        vw = jnp.dot(v, w, preferred_element_type=jnp.float32)
        return _lrelu(jnp.dot(a, vw, preferred_element_type=jnp.float32) + b)

    h = gcn(h, w1, b1)                   # [GN, 128] (16 valid lanes)
    h = gcn(h, w2, b2)                   # (32 valid lanes)
    h = gcn(h, w3, b3)                   # (64 valid lanes)
    h = gcn(h, w4, b4)                   # (50 valid lanes) conv4 + folded BN

    # global_add_pool: sum the 8 nodes of each graph (sublane-group reduce).
    gn = h.shape[0]
    pooled = jnp.sum(h.reshape(gn // NODES, NODES, LANES), axis=1)  # [G, 128]

    # FC head (dropout p=0.2 is identity in eval mode); all full-width.
    o = _lrelu(jnp.dot(pooled, fw1, preferred_element_type=jnp.float32) + fb1)
    o = _lrelu(jnp.dot(o, fw2, preferred_element_type=jnp.float32) + fb2)
    o = jnp.dot(o, fw3, preferred_element_type=jnp.float32) + fb3

    out_ref[...] = o                     # [G, 128] lane-dense unmasked store


def init_params(key):
    """Deterministic synthetic parameters matching EEGGraphConvNet(reduced_sensors=True)."""
    dims_gcn = [(6, 16), (16, 32), (32, 64), (64, 50)]
    dims_fc = [(50, 30), (30, 20), (20, 2)]
    params = {}
    keys = jax.random.split(key, 16)
    ki = 0
    for li, (fi, fo) in enumerate(dims_gcn, start=1):
        scale = (2.0 / (fi + fo)) ** 0.5
        params[f"w{li}"] = scale * jax.random.normal(keys[ki], (fi, fo), jnp.float32)
        ki += 1
        params[f"b{li}"] = jnp.zeros((1, fo), jnp.float32)
    # BatchNorm(50) default init (running stats).
    params["bn_g"] = jnp.ones((1, 50), jnp.float32)
    params["bn_b"] = jnp.zeros((1, 50), jnp.float32)
    params["bn_m"] = jnp.zeros((1, 50), jnp.float32)
    params["bn_v"] = jnp.ones((1, 50), jnp.float32)
    for li, (fi, fo) in enumerate(dims_fc, start=1):
        scale = (2.0 / (fi + fo)) ** 0.5  # xavier_normal gain=1
        params[f"fw{li}"] = scale * jax.random.normal(keys[ki], (fi, fo), jnp.float32)
        ki += 1
        params[f"fb{li}"] = 0.01 * jax.random.normal(keys[ki], (1, fo), jnp.float32)
        ki += 1
    return params


def pack_params(params):
    """Fold eval-mode BatchNorm into conv4 and pack all weights/biases into a
    single lane-dense f32 slab of full (128,128) tiles (one DMA per call)."""
    f32 = jnp.float32
    bn_scale = params["bn_g"] * jax.lax.rsqrt(params["bn_v"] + BN_EPS)   # [1, 50]
    w4_f = params["w4"] * bn_scale
    b4_f = (params["b4"] - params["bn_m"]) * bn_scale + params["bn_b"]

    slab = jnp.zeros((SLAB_ROWS, LANES), f32)

    def put_w(s, row, w):
        fi, fo = w.shape
        return s.at[row:row + fi, 0:fo].set(w.astype(f32))

    slab = put_w(slab, _W1, params["w1"])
    slab = put_w(slab, _W2, params["w2"])
    slab = put_w(slab, _W3, params["w3"])
    slab = put_w(slab, _W4, w4_f)
    slab = put_w(slab, _FW1, params["fw1"])
    slab = put_w(slab, _FW2, params["fw2"])
    slab = put_w(slab, _FW3, params["fw3"])
    for k, b in enumerate([params["b1"], params["b2"], params["b3"], b4_f,
                           params["fb1"], params["fb2"], params["fb3"]]):
        slab = slab.at[_BIAS + k, 0:b.shape[1]].set(b[0].astype(f32))
    return slab


def _graphs_per_step(num_graphs):
    """Graphs per grid step: GN = G*8 a multiple of 128, block-diag adjacency
    capped at 512x512, and >= 2 grid steps when possible (v7x megacore)."""
    half = -(-num_graphs // 2)
    g = min(MAX_GRAPHS_PER_STEP, max(MIN_GRAPHS_PER_STEP, half))
    return -(-g // MIN_GRAPHS_PER_STEP) * MIN_GRAPHS_PER_STEP


def _cost_estimate(num_steps, g_step):
    gn = g_step * NODES
    per_step = 4 * (2 * gn * LANES * LANES + 2 * gn * gn * LANES)   # GCN layers
    per_step += 3 * (2 * g_step * LANES * LANES)                    # FC head
    bytes_accessed = (num_steps * (gn * LANES + gn * gn + g_step * LANES) * 4
                      + SLAB_ROWS * LANES * 4)
    return pl.CostEstimate(flops=per_step * num_steps, transcendentals=0,
                           bytes_accessed=bytes_accessed)


@jax.jit
def eeg_graph_conv_net(x, edge_index, edge_weight, batch, slab):
    """Forward pass. x: [N, 6] f32 node features (N = num_graphs * 8, standard
    PyG graph-major batching), edge_index: [2, E] int32 intra-graph edges,
    edge_weight: [E] f32, slab: packed parameters from pack_params().
    Returns [num_graphs, 2] logits."""
    del batch  # TODO(synk): pooling assumes PyG graph-major batching with the
    #            fixed 8-node montage; arbitrary `batch` vectors unsupported.
    n_nodes, feat = x.shape
    num_graphs = n_nodes // NODES

    # Per-graph weighted adjacency A[g, dst_local, src_local] = sum(edge_weight)
    # (GCNConv(normalize=False): weighted message sum at the target node),
    # built with a single flat 1-D scatter-add.
    # TODO(synk): the data pipeline could deliver [G, 8, 8] directly and drop
    #             this scatter from the per-call critical path entirely.
    src, dst = edge_index[0], edge_index[1]
    flat = (dst // NODES) * (NODES * NODES) + (dst % NODES) * NODES + src % NODES
    adj_blocks = jnp.zeros((num_graphs * NODES * NODES,), jnp.float32)
    adj_blocks = adj_blocks.at[flat].add(edge_weight.astype(jnp.float32))
    adj_blocks = adj_blocks.reshape(num_graphs, NODES, NODES)

    # Grid sizing.
    g_step = _graphs_per_step(num_graphs)
    num_steps = -(-num_graphs // g_step)
    gp = num_steps * g_step
    gn = g_step * NODES
    pad = gp - num_graphs
    if pad:
        adj_blocks = jnp.pad(adj_blocks, ((0, pad), (0, 0), (0, 0)))

    # Per-step block-diagonal adjacency, flattened to [num_steps*GN, GN].
    eye = jnp.eye(g_step, dtype=jnp.float32)
    adj2d = (adj_blocks.reshape(num_steps, g_step, NODES, 1, NODES)
             * eye.reshape(1, g_step, 1, g_step, 1)
             ).reshape(num_steps * gn, gn)

    # Node features zero-padded to 128 lanes and gp*8 rows (lane-dense loads).
    x2d = jnp.pad(x.astype(jnp.float32),
                  ((0, gp * NODES - n_nodes), (0, LANES - feat)))

    out = pl.pallas_call(
        eeg_gcn_kernel,
        out_shape=jax.ShapeDtypeStruct((gp, LANES), jnp.float32),
        grid=(num_steps,),
        in_specs=[
            pl.BlockSpec((gn, LANES), lambda i: (i, 0)),
            pl.BlockSpec((gn, gn), lambda i: (i, 0)),
            pl.BlockSpec((SLAB_ROWS, LANES), lambda i: (0, 0)),  # fetched once
        ],
        out_specs=pl.BlockSpec((g_step, LANES), lambda i: (i, 0)),
        compiler_params=pltpu.CompilerParams(
            dimension_semantics=("parallel",)),
        cost_estimate=_cost_estimate(num_steps, g_step),
    )(x2d, adj2d, slab)

    return out[:num_graphs, :2]


def _reference_forward(x, adj, pool, p):
    """Pure-JAX reference of the original module's math (unfolded BN)."""
    def gcn(h, w, b):
        return adj @ (h @ w) + b
    h = _lrelu(gcn(x, p["w1"], p["b1"]))
    h = _lrelu(gcn(h, p["w2"], p["b2"]))
    h = _lrelu(gcn(h, p["w3"], p["b3"]))
    h = gcn(h, p["w4"], p["b4"])
    h = (h - p["bn_m"]) / jnp.sqrt(p["bn_v"] + BN_EPS) * p["bn_g"] + p["bn_b"]
    h = _lrelu(h)
    out = pool @ h
    out = _lrelu(out @ p["fw1"] + p["fb1"])
    out = _lrelu(out @ p["fw2"] + p["fb2"])
    return out @ p["fw3"] + p["fb3"]


if __name__ == "__main__":
    key = jax.random.PRNGKey(0)
    k_feat, k_w, k_param = jax.random.split(key, 3)

    # reduced_sensors=True -> 8 sensor nodes per graph; batch of 32 graphs
    # (module default batch_size) -> 2 parallel grid steps of 16 graphs each.
    num_graphs = 32
    n_nodes = num_graphs * NODES

    x = jax.random.normal(k_feat, (n_nodes, 6), jnp.float32)

    # Fully-connected (no self loop) intra-graph edges.
    srcs, dsts = [], []
    for gph in range(num_graphs):
        base = gph * NODES
        for i in range(NODES):
            for j in range(NODES):
                if i != j:
                    srcs.append(base + i)
                    dsts.append(base + j)
    edge_index = jnp.array([srcs, dsts], dtype=jnp.int32)        # [2, E]
    edge_weight = jax.random.uniform(k_w, (edge_index.shape[1],), jnp.float32)
    batch = jnp.repeat(jnp.arange(num_graphs, dtype=jnp.int32), NODES)

    params = init_params(k_param)
    slab = pack_params(params)   # hoisted: packed once, reused for every call

    out = eeg_graph_conv_net(x, edge_index, edge_weight, batch, slab)
    out = jax.block_until_ready(out)

    # Verify against a pure-JAX reference (dense adjacency, unfolded BN).
    adj_d = jnp.zeros((n_nodes, n_nodes), jnp.float32).at[
        edge_index[1], edge_index[0]].add(edge_weight)
    pool = (batch[None, :] == jnp.arange(num_graphs)[:, None]).astype(jnp.float32)
    ref = _reference_forward(x, adj_d, pool, params)
    assert out.shape == (num_graphs, 2)
    assert jnp.allclose(out, ref, atol=1e-3, rtol=1e-3), (out, ref)

    print("KERNEL_OK")
</pallas_src>

<mosaic_0001>
module attributes {stable_mosaic.version = 11 : i64} {
  func.func private @main(%arg0: i32) attributes {dimension_semantics = [#tpu.dimension_semantics<core_parallel>], iteration_bounds = array<i64: 2>, tpu.core_type = #tpu.core_type<sc_scalar_subcore>, window_params = []} {
    return
  }
}

module attributes {stable_mosaic.version = 11 : i64} {
  func.func private @main(%arg0: i32) attributes {dimension_semantics = [#tpu.dimension_semantics<core_parallel>], iteration_bounds = array<i64: 2>, tpu.core_type = #tpu.core_type<sc_scalar_subcore>, window_params = []} {
    return
  }
}

module attributes {stable_mosaic.version = 11 : i64} {
  func.func @eeg_gcn_kernel(%arg0: i32, %arg1: memref<128x128xf32, #tpu.memory_space<vmem>>, %arg2: memref<128x128xf32, #tpu.memory_space<vmem>>, %arg3: memref<904x128xf32, #tpu.memory_space<vmem>>, %arg4: memref<16x128xf32, #tpu.memory_space<vmem>>) attributes {dimension_semantics = [#tpu.dimension_semantics<parallel>], iteration_bounds = array<i64: 2>, scalar_prefetch = 0 : i64, scratch_operands = 0 : i64, tpu.core_type = #tpu.core_type<tc>, window_params = [{transform_indices = @transform_0, window_bounds = array<i64: 128, 128>}, {transform_indices = @transform_1, window_bounds = array<i64: 128, 128>}, {pipeline_mode = #tpu.pipeline_mode<synchronous>, transform_indices = @transform_2, window_bounds = array<i64: 904, 128>}, {transform_indices = @transform_3, window_bounds = array<i64: 16, 128>}]} {
    %c0 = arith.constant 0 : index
    %c0_0 = arith.constant 0 : index
    %0 = vector.load %arg2[%c0, %c0_0] : memref<128x128xf32, #tpu.memory_space<vmem>>, vector<128x128xf32>
    %c0_1 = arith.constant 0 : index
    %c0_2 = arith.constant 0 : index
    %1 = vector.load %arg1[%c0_1, %c0_2] : memref<128x128xf32, #tpu.memory_space<vmem>>, vector<128x128xf32>
    %c0_3 = arith.constant 0 : index
    %c0_4 = arith.constant 0 : index
    %2 = vector.load %arg3[%c0_3, %c0_4] : memref<904x128xf32, #tpu.memory_space<vmem>>, vector<128x128xf32>
    %c128 = arith.constant 128 : index
    %c0_5 = arith.constant 0 : index
    %3 = vector.load %arg3[%c128, %c0_5] : memref<904x128xf32, #tpu.memory_space<vmem>>, vector<128x128xf32>
    %c256 = arith.constant 256 : index
    %c0_6 = arith.constant 0 : index
    %4 = vector.load %arg3[%c256, %c0_6] : memref<904x128xf32, #tpu.memory_space<vmem>>, vector<128x128xf32>
    %c384 = arith.constant 384 : index
    %c0_7 = arith.constant 0 : index
    %5 = vector.load %arg3[%c384, %c0_7] : memref<904x128xf32, #tpu.memory_space<vmem>>, vector<128x128xf32>
    %c512 = arith.constant 512 : index
    %c0_8 = arith.constant 0 : index
    %6 = vector.load %arg3[%c512, %c0_8] : memref<904x128xf32, #tpu.memory_space<vmem>>, vector<128x128xf32>
    %c640 = arith.constant 640 : index
    %c0_9 = arith.constant 0 : index
    %7 = vector.load %arg3[%c640, %c0_9] : memref<904x128xf32, #tpu.memory_space<vmem>>, vector<128x128xf32>
    %c768 = arith.constant 768 : index
    %c0_10 = arith.constant 0 : index
    %8 = vector.load %arg3[%c768, %c0_10] : memref<904x128xf32, #tpu.memory_space<vmem>>, vector<128x128xf32>
    %c896 = arith.constant 896 : index
    %c0_11 = arith.constant 0 : index
    %9 = vector.load %arg3[%c896, %c0_11] : memref<904x128xf32, #tpu.memory_space<vmem>>, vector<8x128xf32>
    %10 = vector.extract_strided_slice %9 {offsets = [0, 0], sizes = [1, 128], strides = [1, 1]} : vector<8x128xf32> to vector<1x128xf32>
    %11 = vector.extract_strided_slice %9 {offsets = [1, 0], sizes = [1, 128], strides = [1, 1]} : vector<8x128xf32> to vector<1x128xf32>
    %12 = vector.extract_strided_slice %9 {offsets = [2, 0], sizes = [1, 128], strides = [1, 1]} : vector<8x128xf32> to vector<1x128xf32>
    %13 = vector.extract_strided_slice %9 {offsets = [3, 0], sizes = [1, 128], strides = [1, 1]} : vector<8x128xf32> to vector<1x128xf32>
    %14 = vector.extract_strided_slice %9 {offsets = [4, 0], sizes = [1, 128], strides = [1, 1]} : vector<8x128xf32> to vector<1x128xf32>
    %15 = vector.extract_strided_slice %9 {offsets = [5, 0], sizes = [1, 128], strides = [1, 1]} : vector<8x128xf32> to vector<1x128xf32>
    %16 = vector.extract_strided_slice %9 {offsets = [6, 0], sizes = [1, 128], strides = [1, 1]} : vector<8x128xf32> to vector<1x128xf32>
    %cst = arith.constant dense<0.000000e+00> : vector<128x128xf32>
    %17 = tpu.matmul %1, %2, %cst {dimension_numbers = #tpu.dot_dimension_numbers<[1], [0], [0], [1], [0, 0, 1, 1], [], []>} : vector<128x128xf32>, vector<128x128xf32>, vector<128x128xf32> -> vector<128x128xf32>
    %cst_12 = arith.constant dense<0.000000e+00> : vector<128x128xf32>
    %18 = tpu.matmul %0, %17, %cst_12 {dimension_numbers = #tpu.dot_dimension_numbers<[1], [0], [0], [1], [0, 0, 1, 1], [], []>} : vector<128x128xf32>, vector<128x128xf32>, vector<128x128xf32> -> vector<128x128xf32>
    %19 = vector.broadcast %10 : vector<1x128xf32> to vector<128x128xf32>
    %20 = arith.addf %18, %19 : vector<128x128xf32>
    %cst_13 = arith.constant 0.000000e+00 : f32
    %21 = vector.broadcast %cst_13 : f32 to vector<128x128xf32>
    %22 = arith.cmpf ogt, %20, %21 : vector<128x128xf32>
    %cst_14 = arith.constant 0.00999999977 : f32
    %23 = vector.broadcast %cst_14 : f32 to vector<128x128xf32>
    %24 = arith.mulf %23, %20 : vector<128x128xf32>
    %25 = arith.select %22, %20, %24 : vector<128x128xi1>, vector<128x128xf32>
    %cst_15 = arith.constant dense<0.000000e+00> : vector<128x128xf32>
    %26 = tpu.matmul %25, %3, %cst_15 {dimension_numbers = #tpu.dot_dimension_numbers<[1], [0], [0], [1], [0, 0, 1, 1], [], []>} : vector<128x128xf32>, vector<128x128xf32>, vector<128x128xf32> -> vector<128x128xf32>
    %cst_16 = arith.constant dense<0.000000e+00> : vector<128x128xf32>
    %27 = tpu.matmul %0, %26, %cst_16 {dimension_numbers = #tpu.dot_dimension_numbers<[1], [0], [0], [1], [0, 0, 1, 1], [], []>} : vector<128x128xf32>, vector<128x128xf32>, vector<128x128xf32> -> vector<128x128xf32>
    %28 = vector.broadcast %11 : vector<1x128xf32> to vector<128x128xf32>
    %29 = arith.addf %27, %28 : vector<128x128xf32>
    %cst_17 = arith.constant 0.000000e+00 : f32
    %30 = vector.broadcast %cst_17 : f32 to vector<128x128xf32>
    %31 = arith.cmpf ogt, %29, %30 : vector<128x128xf32>
    %cst_18 = arith.constant 0.00999999977 : f32
    %32 = vector.broadcast %cst_18 : f32 to vector<128x128xf32>
    %33 = arith.mulf %32, %29 : vector<128x128xf32>
    %34 = arith.select %31, %29, %33 : vector<128x128xi1>, vector<128x128xf32>
    %cst_19 = arith.constant dense<0.000000e+00> : vector<128x128xf32>
    %35 = tpu.matmul %34, %4, %cst_19 {dimension_numbers = #tpu.dot_dimension_numbers<[1], [0], [0], [1], [0, 0, 1, 1], [], []>} : vector<128x128xf32>, vector<128x128xf32>, vector<128x128xf32> -> vector<128x128xf32>
    %cst_20 = arith.constant dense<0.000000e+00> : vector<128x128xf32>
    %36 = tpu.matmul %0, %35, %cst_20 {dimension_numbers = #tpu.dot_dimension_numbers<[1], [0], [0], [1], [0, 0, 1, 1], [], []>} : vector<128x128xf32>, vector<128x128xf32>, vector<128x128xf32> -> vector<128x128xf32>
    %37 = vector.broadcast %12 : vector<1x128xf32> to vector<128x128xf32>
    %38 = arith.addf %36, %37 : vector<128x128xf32>
    %cst_21 = arith.constant 0.000000e+00 : f32
    %39 = vector.broadcast %cst_21 : f32 to vector<128x128xf32>
    %40 = arith.cmpf ogt, %38, %39 : vector<128x128xf32>
    %cst_22 = arith.constant 0.00999999977 : f32
    %41 = vector.broadcast %cst_22 : f32 to vector<128x128xf32>
    %42 = arith.mulf %41, %38 : vector<128x128xf32>
    %43 = arith.select %40, %38, %42 : vector<128x128xi1>, vector<128x128xf32>
    %cst_23 = arith.constant dense<0.000000e+00> : vector<128x128xf32>
    %44 = tpu.matmul %43, %5, %cst_23 {dimension_numbers = #tpu.dot_dimension_numbers<[1], [0], [0], [1], [0, 0, 1, 1], [], []>} : vector<128x128xf32>, vector<128x128xf32>, vector<128x128xf32> -> vector<128x128xf32>
    %cst_24 = arith.constant dense<0.000000e+00> : vector<128x128xf32>
    %45 = tpu.matmul %0, %44, %cst_24 {dimension_numbers = #tpu.dot_dimension_numbers<[1], [0], [0], [1], [0, 0, 1, 1], [], []>} : vector<128x128xf32>, vector<128x128xf32>, vector<128x128xf32> -> vector<128x128xf32>
    %46 = vector.broadcast %13 : vector<1x128xf32> to vector<128x128xf32>
    %47 = arith.addf %45, %46 : vector<128x128xf32>
    %cst_25 = arith.constant 0.000000e+00 : f32
    %48 = vector.broadcast %cst_25 : f32 to vector<128x128xf32>
    %49 = arith.cmpf ogt, %47, %48 : vector<128x128xf32>
    %cst_26 = arith.constant 0.00999999977 : f32
    %50 = vector.broadcast %cst_26 : f32 to vector<128x128xf32>
    %51 = arith.mulf %50, %47 : vector<128x128xf32>
    %52 = arith.select %49, %47, %51 : vector<128x128xi1>, vector<128x128xf32>
    %53 = vector.shape_cast %52 : vector<128x128xf32> to vector<16x8x128xf32>
    %cst_27 = arith.constant dense<0.000000e+00> : vector<16x128xf32>
    %54 = vector.multi_reduction <add>, %53, %cst_27 [1] : vector<16x8x128xf32> to vector<16x128xf32>
    %cst_28 = arith.constant dense<0.000000e+00> : vector<16x128xf32>
    %55 = tpu.matmul %54, %6, %cst_28 {dimension_numbers = #tpu.dot_dimension_numbers<[1], [0], [0], [1], [0, 0, 1, 1], [], []>} : vector<16x128xf32>, vector<128x128xf32>, vector<16x128xf32> -> vector<16x128xf32>
    %56 = vector.broadcast %14 : vector<1x128xf32> to vector<16x128xf32>
    %57 = arith.addf %55, %56 : vector<16x128xf32>
    %cst_29 = arith.constant 0.000000e+00 : f32
    %58 = vector.broadcast %cst_29 : f32 to vector<16x128xf32>
    %59 = arith.cmpf ogt, %57, %58 : vector<16x128xf32>
    %cst_30 = arith.constant 0.00999999977 : f32
    %60 = vector.broadcast %cst_30 : f32 to vector<16x128xf32>
    %61 = arith.mulf %60, %57 : vector<16x128xf32>
    %62 = arith.select %59, %57, %61 : vector<16x128xi1>, vector<16x128xf32>
    %cst_31 = arith.constant dense<0.000000e+00> : vector<16x128xf32>
    %63 = tpu.matmul %62, %7, %cst_31 {dimension_numbers = #tpu.dot_dimension_numbers<[1], [0], [0], [1], [0, 0, 1, 1], [], []>} : vector<16x128xf32>, vector<128x128xf32>, vector<16x128xf32> -> vector<16x128xf32>
    %64 = vector.broadcast %15 : vector<1x128xf32> to vector<16x128xf32>
    %65 = arith.addf %63, %64 : vector<16x128xf32>
    %cst_32 = arith.constant 0.000000e+00 : f32
    %66 = vector.broadcast %cst_32 : f32 to vector<16x128xf32>
    %67 = arith.cmpf ogt, %65, %66 : vector<16x128xf32>
    %cst_33 = arith.constant 0.00999999977 : f32
    %68 = vector.broadcast %cst_33 : f32 to vector<16x128xf32>
    %69 = arith.mulf %68, %65 : vector<16x128xf32>
    %70 = arith.select %67, %65, %69 : vector<16x128xi1>, vector<16x128xf32>
    %cst_34 = arith.constant dense<0.000000e+00> : vector<16x128xf32>
    %71 = tpu.matmul %70, %8, %cst_34 {dimension_numbers = #tpu.dot_dimension_numbers<[1], [0], [0], [1], [0, 0, 1, 1], [], []>} : vector<16x128xf32>, vector<128x128xf32>, vector<16x128xf32> -> vector<16x128xf32>
    %72 = vector.broadcast %16 : vector<1x128xf32> to vector<16x128xf32>
    %73 = arith.addf %71, %72 : vector<16x128xf32>
    %c0_35 = arith.constant 0 : index
    %c0_36 = arith.constant 0 : index
    %74 = vector.load %arg4[%c0_35, %c0_36] : memref<16x128xf32, #tpu.memory_space<vmem>>, vector<16x128xf32>
    tpu.vector_store %arg4[%c0_35, %c0_36], %73 {strides = array<i32>} : memref<16x128xf32, #tpu.memory_space<vmem>>, vector<16x128xf32>,
    return
  }
  func.func @transform_0(%arg0: i32) -> (i32, i32) {
    %c0_i32 = arith.constant 0 : i32
    %c0_i32_0 = arith.constant 0 : i32
    return %arg0, %c0_i32 : i32, i32
  }
  func.func @transform_1(%arg0: i32) -> (i32, i32) {
    %c0_i32 = arith.constant 0 : i32
    %c0_i32_0 = arith.constant 0 : i32
    return %arg0, %c0_i32 : i32, i32
  }
  func.func @transform_2(%arg0: i32) -> (i32, i32) {
    %c0_i32 = arith.constant 0 : i32
    %c0_i32_0 = arith.constant 0 : i32
    %c0_i32_1 = arith.constant 0 : i32
    return %c0_i32, %c0_i32_0 : i32, i32
  }
  func.func @transform_3(%arg0: i32) -> (i32, i32) {
    %c0_i32 = arith.constant 0 : i32
    %c0_i32_0 = arith.constant 0 : i32
    return %arg0, %c0_i32 : i32, i32
  }
}

</mosaic_0001>

<bundles_post_ra>
// kernel: mul.16
= control target key start
LH: loop header
LB: loop body
LE: loop exit
PB: predicated region body
PF: predicated region fallthrough
CT: control target
= control target key end

     0   :  { %2 = vsyncpa [#allocation1], 0  ;;  %s567_s6 = smov [#allocation0]   ;;  %s1108_s0 = inlined_call_operand.hbm [shape: f32[2048], index: 0, kind: input, shape index: {}]   ;;  %s1109_s1 = inlined_call_operand.vmem [shape: f32[2,16,8,8], index: 1, kind: output, shape index: {}]  }
   0x1   :  { %s7_s7 = sshll.u32 %s567_s6, 4  ;;  %s8_s7 = int_to_ptr.vmem [resolvable:$true] %s7_s7 }
   0x2   :  { %s553_s8 = scalar_lea.vmem %s8_s7, 256  ;;  %p558_p1 = scmp.lt.s32.totalorder %s8_s7, %s8_s7 }
   0x3   :  { %p554_p0 = scmp.ne.s32.totalorder %s8_s7, %s553_s8  ;;  %p559_p2 = scmp.lt.s32.totalorder %s553_s8, %s553_s8 }
   0x5   :  { %p560_p3 = por %p559_p2, %p558_p1 }
   0x7   :  { %p561_p4 = pnand %p560_p3, %p554_p0 }
   0x9   :  { %564 = shalt.err (!%p561_p4)
}
   0xa   :  { %10 = dma.hbm_to_vmem [thread:$0]  %s1108_s0, 256, %s8_s7, [#allocation1]  }
   0xb   :  { %565 = dma.done.wait [#allocation1], 256  }
   0xc   :  { %566 = vsyncadd [#allocation1], 4294967040  ;;  %v54_v0 = vld [vmem:[#allocation0] sm:$0xff]   ;;  %v67_v1 = vld [vmem:[#allocation0 + $0x8] sm:$0xff]   ;;  %vm13_vm0 = vcmask 64512   ;;  %s568_s0 = smov 112  }
   0xd   :  { %55 = vrot.lane.b32.xlu1 %v54_v0, %s568_s0  ;;  %s569_s11 = smov 120   ;;  %14 = vst.msk [vmem:[%s1109_s1] ss:$16 sm:$0x3] %vm13_vm0, %v54_v0   ;;  %s570_s28 = smov 104  }
   0xe   :  { %30 = vrot.lane.b32.xlu0 %v54_v0, %s569_s11  ;;  %15 = vst.msk [vmem:[%s1109_s1] ss:$16 sm:$0xc] %vm13_vm0, %v54_v0   ;;  %16 = vst.msk [vmem:[%s1109_s1] ss:$16 sm:$0x30] %vm13_vm0, %v54_v0  }
   0xf   :  { %17 = vst.msk [vmem:[%s1109_s1] ss:$16 sm:$0xc0] %vm13_vm0, %v54_v0   ;;  %405 = vst.msk [vmem:[%s1109_s1 + $0x80] ss:$16 sm:$0x3] %vm13_vm0, %v67_v1  }
  0x10   :  { %406 = vst.msk [vmem:[%s1109_s1 + $0x80] ss:$16 sm:$0xc] %vm13_vm0, %v67_v1   ;;  %407 = vst.msk [vmem:[%s1109_s1 + $0x80] ss:$16 sm:$0x30] %vm13_vm0, %v67_v1  }
  0x11   :  { %408 = vst.msk [vmem:[%s1109_s1 + $0x80] ss:$16 sm:$0xc0] %vm13_vm0, %v67_v1   ;;  %68 = vrot.lane.b32.xlu1 %v67_v1, %s568_s0  ;;  %s571_s29 = smov 96   ;;  %s572_s30 = smov 88  }
  0x12   :  { %43 = vrot.lane.b32.xlu0 %v67_v1, %s569_s11  ;;  %s573_s2 = smov 80   ;;  %s574_s3 = smov 72  }
  0x13   :  { %s575_s4 = smov 64   ;;  %s576_s5 = smov 56  }
  0x14   :  { %s577_s6 = smov 48   ;;  %s578_s7 = smov 40  }
  0x15   :  { %93 = vrot.lane.b32.xlu1 %v67_v1, %s570_s28  ;;  %s579_s8 = smov 32   ;;  %s580_s9 = smov 24  }
  0x16   :  { %80 = vrot.lane.b32.xlu0 %v54_v0, %s570_s28  ;;  %s581_s10 = smov 16   ;;  %s582_s0 = smov 8  }
  0x19   :  { %118 = vrot.lane.b32.xlu1 %v67_v1, %s571_s29 }
  0x1a   :  { %105 = vrot.lane.b32.xlu0 %v54_v0, %s571_s29 }
  0x1d   :  { %143 = vrot.lane.b32.xlu1 %v67_v1, %s572_s30 }
  0x1e   :  { %130 = vrot.lane.b32.xlu0 %v54_v0, %s572_s30 }
  0x21   :  { %168 = vrot.lane.b32.xlu1 %v67_v1, %s573_s2 }
  0x22   :  { %155 = vrot.lane.b32.xlu0 %v54_v0, %s573_s2 }
  0x25   :  { %193 = vrot.lane.b32.xlu1 %v67_v1, %s574_s3 }
  0x26   :  { %180 = vrot.lane.b32.xlu0 %v54_v0, %s574_s3 }
  0x29   :  { %218 = vrot.lane.b32.xlu1 %v67_v1, %s575_s4 }
  0x2a   :  { %205 = vrot.lane.b32.xlu0 %v54_v0, %s575_s4 }
  0x2d   :  { %243 = vrot.lane.b32.xlu1 %v67_v1, %s576_s5 }
  0x2e   :  { %230 = vrot.lane.b32.xlu0 %v54_v0, %s576_s5 }
  0x31   :  { %268 = vrot.lane.b32.xlu1 %v67_v1, %s577_s6 }
  0x32   :  { %255 = vrot.lane.b32.xlu0 %v54_v0, %s577_s6 }
  0x35   :  { %293 = vrot.lane.b32.xlu1 %v67_v1, %s578_s7 }
  0x36   :  { %280 = vrot.lane.b32.xlu0 %v54_v0, %s578_s7 }
  0x39   :  { %318 = vrot.lane.b32.xlu1 %v67_v1, %s579_s8 }
  0x3a   :  { %305 = vrot.lane.b32.xlu0 %v54_v0, %s579_s8 }
  0x3d   :  { %343 = vrot.lane.b32.xlu1 %v67_v1, %s580_s9 }
  0x3e   :  { %330 = vrot.lane.b32.xlu0 %v54_v0, %s580_s9 }
  0x41   :  { %368 = vrot.lane.b32.xlu1 %v67_v1, %s581_s10 }
  0x42   :  { %355 = vrot.lane.b32.xlu0 %v54_v0, %s581_s10 }
  0x45   :  { %393 = vrot.lane.b32.xlu1 %v67_v1, %s582_s0 }
  0x46   :  { %380 = vrot.lane.b32.xlu0 %v54_v0, %s582_s0 }
  0x7f   :  { %v56_v2 = vpop.permute.xlu1 %55  }
  0x80   :  { %v31_v3 = vpop.permute.xlu0 %30   ;;  %417 = vst.msk [vmem:[%s1109_s1 + $0x2] ss:$16 sm:$0x3] %vm13_vm0, %v56_v2   ;;  %418 = vst.msk [vmem:[%s1109_s1 + $0x2] ss:$16 sm:$0xc] %vm13_vm0, %v56_v2  }
  0x81   :  { %419 = vst.msk [vmem:[%s1109_s1 + $0x2] ss:$16 sm:$0x30] %vm13_vm0, %v56_v2   ;;  %420 = vst.msk [vmem:[%s1109_s1 + $0x2] ss:$16 sm:$0xc0] %vm13_vm0, %v56_v2  }
  0x82   :  { %409 = vst.msk [vmem:[%s1109_s1 + $0x1] ss:$16 sm:$0x3] %vm13_vm0, %v31_v3   ;;  %410 = vst.msk [vmem:[%s1109_s1 + $0x1] ss:$16 sm:$0xc] %vm13_vm0, %v31_v3  }
  0x83   :  { %411 = vst.msk [vmem:[%s1109_s1 + $0x1] ss:$16 sm:$0x30] %vm13_vm0, %v31_v3   ;;  %412 = vst.msk [vmem:[%s1109_s1 + $0x1] ss:$16 sm:$0xc0] %vm13_vm0, %v31_v3   ;;  %v69_v4 = vpop.permute.xlu1 %68  }
  0x84   :  { %v44_v5 = vpop.permute.xlu0 %43   ;;  %421 = vst.msk [vmem:[%s1109_s1 + $0x82] ss:$16 sm:$0x3] %vm13_vm0, %v69_v4   ;;  %422 = vst.msk [vmem:[%s1109_s1 + $0x82] ss:$16 sm:$0xc] %vm13_vm0, %v69_v4  }
  0x85   :  { %423 = vst.msk [vmem:[%s1109_s1 + $0x82] ss:$16 sm:$0x30] %vm13_vm0, %v69_v4   ;;  %424 = vst.msk [vmem:[%s1109_s1 + $0x82] ss:$16 sm:$0xc0] %vm13_vm0, %v69_v4  }
  0x86   :  { %413 = vst.msk [vmem:[%s1109_s1 + $0x81] ss:$16 sm:$0x3] %vm13_vm0, %v44_v5   ;;  %414 = vst.msk [vmem:[%s1109_s1 + $0x81] ss:$16 sm:$0xc] %vm13_vm0, %v44_v5  }
  0x87   :  { %415 = vst.msk [vmem:[%s1109_s1 + $0x81] ss:$16 sm:$0x30] %vm13_vm0, %v44_v5   ;;  %416 = vst.msk [vmem:[%s1109_s1 + $0x81] ss:$16 sm:$0xc0] %vm13_vm0, %v44_v5   ;;  %v94_v6 = vpop.permute.xlu1 %93  }
  0x88   :  { %v81_v7 = vpop.permute.xlu0 %80   ;;  %429 = vst.msk [vmem:[%s1109_s1 + $0x83] ss:$16 sm:$0x3] %vm13_vm0, %v94_v6   ;;  %430 = vst.msk [vmem:[%s1109_s1 + $0x83] ss:$16 sm:$0xc] %vm13_vm0, %v94_v6  }
  0x89   :  { %431 = vst.msk [vmem:[%s1109_s1 + $0x83] ss:$16 sm:$0x30] %vm13_vm0, %v94_v6   ;;  %432 = vst.msk [vmem:[%s1109_s1 + $0x83] ss:$16 sm:$0xc0] %vm13_vm0, %v94_v6  }
  0x8a   :  { %425 = vst.msk [vmem:[%s1109_s1 + $0x3] ss:$16 sm:$0x3] %vm13_vm0, %v81_v7   ;;  %426 = vst.msk [vmem:[%s1109_s1 + $0x3] ss:$16 sm:$0xc] %vm13_vm0, %v81_v7  }
  0x8b   :  { %427 = vst.msk [vmem:[%s1109_s1 + $0x3] ss:$16 sm:$0x30] %vm13_vm0, %v81_v7   ;;  %428 = vst.msk [vmem:[%s1109_s1 + $0x3] ss:$16 sm:$0xc0] %vm13_vm0, %v81_v7   ;;  %v119_v8 = vpop.permute.xlu1 %118  }
  0x8c   :  { %v106_v9 = vpop.permute.xlu0 %105   ;;  %437 = vst.msk [vmem:[%s1109_s1 + $0x84] ss:$16 sm:$0x3] %vm13_vm0, %v119_v8   ;;  %438 = vst.msk [vmem:[%s1109_s1 + $0x84] ss:$16 sm:$0xc] %vm13_vm0, %v119_v8  }
  0x8d   :  { %439 = vst.msk [vmem:[%s1109_s1 + $0x84] ss:$16 sm:$0x30] %vm13_vm0, %v119_v8   ;;  %440 = vst.msk [vmem:[%s1109_s1 + $0x84] ss:$16 sm:$0xc0] %vm13_vm0, %v119_v8  }
  0x8e   :  { %433 = vst.msk [vmem:[%s1109_s1 + $0x4] ss:$16 sm:$0x3] %vm13_vm0, %v106_v9   ;;  %434 = vst.msk [vmem:[%s1109_s1 + $0x4] ss:$16 sm:$0xc] %vm13_vm0, %v106_v9  }
  0x8f   :  { %435 = vst.msk [vmem:[%s1109_s1 + $0x4] ss:$16 sm:$0x30] %vm13_vm0, %v106_v9   ;;  %436 = vst.msk [vmem:[%s1109_s1 + $0x4] ss:$16 sm:$0xc0] %vm13_vm0, %v106_v9   ;;  %v144_v10 = vpop.permute.xlu1 %143  }
  0x90   :  { %v131_v11 = vpop.permute.xlu0 %130   ;;  %445 = vst.msk [vmem:[%s1109_s1 + $0x85] ss:$16 sm:$0x3] %vm13_vm0, %v144_v10   ;;  %446 = vst.msk [vmem:[%s1109_s1 + $0x85] ss:$16 sm:$0xc] %vm13_vm0, %v144_v10  }
  0x91   :  { %447 = vst.msk [vmem:[%s1109_s1 + $0x85] ss:$16 sm:$0x30] %vm13_vm0, %v144_v10   ;;  %448 = vst.msk [vmem:[%s1109_s1 + $0x85] ss:$16 sm:$0xc0] %vm13_vm0, %v144_v10  }
  0x92   :  { %441 = vst.msk [vmem:[%s1109_s1 + $0x5] ss:$16 sm:$0x3] %vm13_vm0, %v131_v11   ;;  %442 = vst.msk [vmem:[%s1109_s1 + $0x5] ss:$16 sm:$0xc] %vm13_vm0, %v131_v11  }
  0x93   :  { %443 = vst.msk [vmem:[%s1109_s1 + $0x5] ss:$16 sm:$0x30] %vm13_vm0, %v131_v11   ;;  %444 = vst.msk [vmem:[%s1109_s1 + $0x5] ss:$16 sm:$0xc0] %vm13_vm0, %v131_v11   ;;  %v169_v12 = vpop.permute.xlu1 %168  }
  0x94   :  { %v156_v13 = vpop.permute.xlu0 %155   ;;  %453 = vst.msk [vmem:[%s1109_s1 + $0x86] ss:$16 sm:$0x3] %vm13_vm0, %v169_v12   ;;  %454 = vst.msk [vmem:[%s1109_s1 + $0x86] ss:$16 sm:$0xc] %vm13_vm0, %v169_v12  }
  0x95   :  { %455 = vst.msk [vmem:[%s1109_s1 + $0x86] ss:$16 sm:$0x30] %vm13_vm0, %v169_v12   ;;  %456 = vst.msk [vmem:[%s1109_s1 + $0x86] ss:$16 sm:$0xc0] %vm13_vm0, %v169_v12  }
  0x96   :  { %449 = vst.msk [vmem:[%s1109_s1 + $0x6] ss:$16 sm:$0x3] %vm13_vm0, %v156_v13   ;;  %450 = vst.msk [vmem:[%s1109_s1 + $0x6] ss:$16 sm:$0xc] %vm13_vm0, %v156_v13  }
  0x97   :  { %451 = vst.msk [vmem:[%s1109_s1 + $0x6] ss:$16 sm:$0x30] %vm13_vm0, %v156_v13   ;;  %452 = vst.msk [vmem:[%s1109_s1 + $0x6] ss:$16 sm:$0xc0] %vm13_vm0, %v156_v13   ;;  %v194_v14 = vpop.permute.xlu1 %193  }
  0x98   :  { %v181_v15 = vpop.permute.xlu0 %180   ;;  %461 = vst.msk [vmem:[%s1109_s1 + $0x87] ss:$16 sm:$0x3] %vm13_vm0, %v194_v14   ;;  %462 = vst.msk [vmem:[%s1109_s1 + $0x87] ss:$16 sm:$0xc] %vm13_vm0, %v194_v14  }
  0x99   :  { %463 = vst.msk [vmem:[%s1109_s1 + $0x87] ss:$16 sm:$0x30] %vm13_vm0, %v194_v14   ;;  %464 = vst.msk [vmem:[%s1109_s1 + $0x87] ss:$16 sm:$0xc0] %vm13_vm0, %v194_v14  }
  0x9a   :  { %457 = vst.msk [vmem:[%s1109_s1 + $0x7] ss:$16 sm:$0x3] %vm13_vm0, %v181_v15   ;;  %458 = vst.msk [vmem:[%s1109_s1 + $0x7] ss:$16 sm:$0xc] %vm13_vm0, %v181_v15  }
  0x9b   :  { %459 = vst.msk [vmem:[%s1109_s1 + $0x7] ss:$16 sm:$0x30] %vm13_vm0, %v181_v15   ;;  %460 = vst.msk [vmem:[%s1109_s1 + $0x7] ss:$16 sm:$0xc0] %vm13_vm0, %v181_v15   ;;  %v219_v16 = vpop.permute.xlu1 %218  }
  0x9c   :  { %v206_v17 = vpop.permute.xlu0 %205   ;;  %469 = vst.msk [vmem:[%s1109_s1 + $0x88] ss:$16 sm:$0x3] %vm13_vm0, %v219_v16   ;;  %470 = vst.msk [vmem:[%s1109_s1 + $0x88] ss:$16 sm:$0xc] %vm13_vm0, %v219_v16  }
  0x9d   :  { %471 = vst.msk [vmem:[%s1109_s1 + $0x88] ss:$16 sm:$0x30] %vm13_vm0, %v219_v16   ;;  %472 = vst.msk [vmem:[%s1109_s1 + $0x88] ss:$16 sm:$0xc0] %vm13_vm0, %v219_v16  }
  0x9e   :  { %465 = vst.msk [vmem:[%s1109_s1 + $0x8] ss:$16 sm:$0x3] %vm13_vm0, %v206_v17   ;;  %466 = vst.msk [vmem:[%s1109_s1 + $0x8] ss:$16 sm:$0xc] %vm13_vm0, %v206_v17  }
  0x9f   :  { %467 = vst.msk [vmem:[%s1109_s1 + $0x8] ss:$16 sm:$0x30] %vm13_vm0, %v206_v17   ;;  %468 = vst.msk [vmem:[%s1109_s1 + $0x8] ss:$16 sm:$0xc0] %vm13_vm0, %v206_v17   ;;  %v244_v18 = vpop.permute.xlu1 %243  }
  0xa0   :  { %v231_v19 = vpop.permute.xlu0 %230   ;;  %477 = vst.msk [vmem:[%s1109_s1 + $0x89] ss:$16 sm:$0x3] %vm13_vm0, %v244_v18   ;;  %478 = vst.msk [vmem:[%s1109_s1 + $0x89] ss:$16 sm:$0xc] %vm13_vm0, %v244_v18  }
  0xa1   :  { %479 = vst.msk [vmem:[%s1109_s1 + $0x89] ss:$16 sm:$0x30] %vm13_vm0, %v244_v18   ;;  %480 = vst.msk [vmem:[%s1109_s1 + $0x89] ss:$16 sm:$0xc0] %vm13_vm0, %v244_v18  }
  0xa2   :  { %473 = vst.msk [vmem:[%s1109_s1 + $0x9] ss:$16 sm:$0x3] %vm13_vm0, %v231_v19   ;;  %474 = vst.msk [vmem:[%s1109_s1 + $0x9] ss:$16 sm:$0xc] %vm13_vm0, %v231_v19  }
  0xa3   :  { %475 = vst.msk [vmem:[%s1109_s1 + $0x9] ss:$16 sm:$0x30] %vm13_vm0, %v231_v19   ;;  %476 = vst.msk [vmem:[%s1109_s1 + $0x9] ss:$16 sm:$0xc0] %vm13_vm0, %v231_v19   ;;  %v269_v20 = vpop.permute.xlu1 %268  }
  0xa4   :  { %v256_v21 = vpop.permute.xlu0 %255   ;;  %485 = vst.msk [vmem:[%s1109_s1 + $0x8a] ss:$16 sm:$0x3] %vm13_vm0, %v269_v20   ;;  %486 = vst.msk [vmem:[%s1109_s1 + $0x8a] ss:$16 sm:$0xc] %vm13_vm0, %v269_v20  }
  0xa5   :  { %487 = vst.msk [vmem:[%s1109_s1 + $0x8a] ss:$16 sm:$0x30] %vm13_vm0, %v269_v20   ;;  %488 = vst.msk [vmem:[%s1109_s1 + $0x8a] ss:$16 sm:$0xc0] %vm13_vm0, %v269_v20  }
  0xa6   :  { %481 = vst.msk [vmem:[%s1109_s1 + $0xa] ss:$16 sm:$0x3] %vm13_vm0, %v256_v21   ;;  %482 = vst.msk [vmem:[%s1109_s1 + $0xa] ss:$16 sm:$0xc] %vm13_vm0, %v256_v21  }
  0xa7   :  { %483 = vst.msk [vmem:[%s1109_s1 + $0xa] ss:$16 sm:$0x30] %vm13_vm0, %v256_v21   ;;  %484 = vst.msk [vmem:[%s1109_s1 + $0xa] ss:$16 sm:$0xc0] %vm13_vm0, %v256_v21   ;;  %v294_v22 = vpop.permute.xlu1 %293  }
  0xa8   :  { %v281_v23 = vpop.permute.xlu0 %280   ;;  %493 = vst.msk [vmem:[%s1109_s1 + $0x8b] ss:$16 sm:$0x3] %vm13_vm0, %v294_v22   ;;  %494 = vst.msk [vmem:[%s1109_s1 + $0x8b] ss:$16 sm:$0xc] %vm13_vm0, %v294_v22  }
  0xa9   :  { %495 = vst.msk [vmem:[%s1109_s1 + $0x8b] ss:$16 sm:$0x30] %vm13_vm0, %v294_v22   ;;  %496 = vst.msk [vmem:[%s1109_s1 + $0x8b] ss:$16 sm:$0xc0] %vm13_vm0, %v294_v22  }
  0xaa   :  { %489 = vst.msk [vmem:[%s1109_s1 + $0xb] ss:$16 sm:$0x3] %vm13_vm0, %v281_v23   ;;  %490 = vst.msk [vmem:[%s1109_s1 + $0xb] ss:$16 sm:$0xc] %vm13_vm0, %v281_v23  }
  0xab   :  { %491 = vst.msk [vmem:[%s1109_s1 + $0xb] ss:$16 sm:$0x30] %vm13_vm0, %v281_v23   ;;  %492 = vst.msk [vmem:[%s1109_s1 + $0xb] ss:$16 sm:$0xc0] %vm13_vm0, %v281_v23   ;;  %v319_v24 = vpop.permute.xlu1 %318  }
  0xac   :  { %v306_v25 = vpop.permute.xlu0 %305   ;;  %501 = vst.msk [vmem:[%s1109_s1 + $0x8c] ss:$16 sm:$0x3] %vm13_vm0, %v319_v24   ;;  %502 = vst.msk [vmem:[%s1109_s1 + $0x8c] ss:$16 sm:$0xc] %vm13_vm0, %v319_v24  }
  0xad   :  { %503 = vst.msk [vmem:[%s1109_s1 + $0x8c] ss:$16 sm:$0x30] %vm13_vm0, %v319_v24   ;;  %504 = vst.msk [vmem:[%s1109_s1 + $0x8c] ss:$16 sm:$0xc0] %vm13_vm0, %v319_v24  }
  0xae   :  { %497 = vst.msk [vmem:[%s1109_s1 + $0xc] ss:$16 sm:$0x3] %vm13_vm0, %v306_v25   ;;  %498 = vst.msk [vmem:[%s1109_s1 + $0xc] ss:$16 sm:$0xc] %vm13_vm0, %v306_v25  }
  0xaf   :  { %499 = vst.msk [vmem:[%s1109_s1 + $0xc] ss:$16 sm:$0x30] %vm13_vm0, %v306_v25   ;;  %500 = vst.msk [vmem:[%s1109_s1 + $0xc] ss:$16 sm:$0xc0] %vm13_vm0, %v306_v25   ;;  %v344_v26 = vpop.permute.xlu1 %343  }
  0xb0   :  { %v331_v27 = vpop.permute.xlu0 %330   ;;  %509 = vst.msk [vmem:[%s1109_s1 + $0x8d] ss:$16 sm:$0x3] %vm13_vm0, %v344_v26   ;;  %510 = vst.msk [vmem:[%s1109_s1 + $0x8d] ss:$16 sm:$0xc] %vm13_vm0, %v344_v26  }
  0xb1   :  { %511 = vst.msk [vmem:[%s1109_s1 + $0x8d] ss:$16 sm:$0x30] %vm13_vm0, %v344_v26   ;;  %512 = vst.msk [vmem:[%s1109_s1 + $0x8d] ss:$16 sm:$0xc0] %vm13_vm0, %v344_v26  }
  0xb2   :  { %505 = vst.msk [vmem:[%s1109_s1 + $0xd] ss:$16 sm:$0x3] %vm13_vm0, %v331_v27   ;;  %506 = vst.msk [vmem:[%s1109_s1 + $0xd] ss:$16 sm:$0xc] %vm13_vm0, %v331_v27  }
  0xb3   :  { %507 = vst.msk [vmem:[%s1109_s1 + $0xd] ss:$16 sm:$0x30] %vm13_vm0, %v331_v27   ;;  %508 = vst.msk [vmem:[%s1109_s1 + $0xd] ss:$16 sm:$0xc0] %vm13_vm0, %v331_v27   ;;  %v369_v28 = vpop.permute.xlu1 %368  }
  0xb4   :  { %v356_v29 = vpop.permute.xlu0 %355   ;;  %517 = vst.msk [vmem:[%s1109_s1 + $0x8e] ss:$16 sm:$0x3] %vm13_vm0, %v369_v28   ;;  %518 = vst.msk [vmem:[%s1109_s1 + $0x8e] ss:$16 sm:$0xc] %vm13_vm0, %v369_v28  }
  0xb5   :  { %519 = vst.msk [vmem:[%s1109_s1 + $0x8e] ss:$16 sm:$0x30] %vm13_vm0, %v369_v28   ;;  %520 = vst.msk [vmem:[%s1109_s1 + $0x8e] ss:$16 sm:$0xc0] %vm13_vm0, %v369_v28  }
  0xb6   :  { %513 = vst.msk [vmem:[%s1109_s1 + $0xe] ss:$16 sm:$0x3] %vm13_vm0, %v356_v29   ;;  %514 = vst.msk [vmem:[%s1109_s1 + $0xe] ss:$16 sm:$0xc] %vm13_vm0, %v356_v29  }
  0xb7   :  { %515 = vst.msk [vmem:[%s1109_s1 + $0xe] ss:$16 sm:$0x30] %vm13_vm0, %v356_v29   ;;  %516 = vst.msk [vmem:[%s1109_s1 + $0xe] ss:$16 sm:$0xc0] %vm13_vm0, %v356_v29   ;;  %v394_v30 = vpop.permute.xlu1 %393  }
  0xb8   :  { %v381_v31 = vpop.permute.xlu0 %380   ;;  %525 = vst.msk [vmem:[%s1109_s1 + $0x8f] ss:$16 sm:$0x3] %vm13_vm0, %v394_v30   ;;  %526 = vst.msk [vmem:[%s1109_s1 + $0x8f] ss:$16 sm:$0xc] %vm13_vm0, %v394_v30  }
  0xb9   :  { %527 = vst.msk [vmem:[%s1109_s1 + $0x8f] ss:$16 sm:$0x30] %vm13_vm0, %v394_v30   ;;  %528 = vst.msk [vmem:[%s1109_s1 + $0x8f] ss:$16 sm:$0xc0] %vm13_vm0, %v394_v30  }
  0xba   :  { %521 = vst.msk [vmem:[%s1109_s1 + $0xf] ss:$16 sm:$0x3] %vm13_vm0, %v381_v31   ;;  %522 = vst.msk [vmem:[%s1109_s1 + $0xf] ss:$16 sm:$0xc] %vm13_vm0, %v381_v31  }
  0xbb   :  { %523 = vst.msk [vmem:[%s1109_s1 + $0xf] ss:$16 sm:$0x30] %vm13_vm0, %v381_v31   ;;  %524 = vst.msk [vmem:[%s1109_s1 + $0xf] ss:$16 sm:$0xc0] %vm13_vm0, %v381_v31  }
  0xbc   :  { %404 = vsyncpa [#allocation1], 1 }

// kernel: eeg_graph_conv_net.1
= control target key start
LH: loop header
LB: loop body
LE: loop exit
PB: predicated region body
PF: predicated region fallthrough
CT: control target
= control target key end

     0   :  { %s3092_s12 = smov 0   ;;  %s3716_s0 = inlined_call_operand.vmem [shape: f32[256,128], index: 0, kind: input, shape index: {}]   ;;  %s3717_s1 = inlined_call_operand.vmem [shape: f32[256,128], index: 1, kind: input, shape index: {}]   ;;  %s3718_s2 = inlined_call_operand.vmem [shape: f32[904,128], index: 2, kind: input, shape index: {}]   ;;  %s3719_s3 = inlined_call_operand.vmem [shape: f32[32,128], index: 3, kind: output, shape index: {}]  }
   0x1 LB: > { %s2163_s13 = sadd.s32 4294967295, %s3070_s12   ;;  %p2167_p0 = scmp.ge.s32.totalorder %s3070_s12, 1  ;;  %s3070_s12 = sphi %s3092_s12, %s13_s12  }
   0x2   : > { %p149_p1 = scmp.lt.s32.totalorder %s3070_s12, 3 }
   0x4   : > { %p150_p2 = pnand %p2167_p0, %p149_p1 }
   0x5   : > { %s2168_s18 = sshll.u32 (!%p150_p2), %s2163_s13, 4  ;;  %s2172_s5 = sshll.u32 (!%p150_p2), %s2163_s13, 1 }
   0x6   : > { %153 = sbr.rel (%p150_p2) target bundleno = 2507 (0x9cb), region = 32  ;;  %p179_p3 = scmp.lt.s32.totalorder (!%p150_p2), %s2168_s18, 31 }
   0x7   : > { %p191_p4 = scmp.lt.s32.totalorder (!%p150_p2), %s2172_s5, 3 }
   0xb   : > { %v243_v0 = vld [vmem:[%s3718_s2 + $0x78] sm:$0xff]  ;;  %v242_v1 = vld [vmem:[%s3718_s2 + $0x70] sm:$0xff]  ;;  %v241_v2 = vld [vmem:[%s3718_s2 + $0x68] sm:$0xff]  ;;  %s3721_s18 = smov (!%p179_p3, %s2168_s18), 31  ;;  %s3723_s5 = smov (!%p191_p4, %s2172_s5), 3 }
   0xc   : > { %2486 = vmatprep.subr.mxu0 %v243_v0  ;;  %v240_v3 = vld [vmem:[%s3718_s2 + $0x60] sm:$0xff]  ;;  %s2169_s23 = sshll.u32 %s3721_s18, 3  ;;  %v239_v4 = vld [vmem:[%s3718_s2 + $0x58] sm:$0xff]  ;;  %v238_v6 = vld [vmem:[%s3718_s2 + $0x50] sm:$0xff]  ;;  %s2173_s6 = sshll.u32 %s3723_s5, 3 }
   0xd   : > { %2487 = vmatpush3.msra.mxu0 %v243_v0  ;;  %s3125_s28 = scalar_lea.vmem %s3716_s0, %s2169_s23  ;;  %v237_v7 = vld [vmem:[%s3718_s2 + $0x48] sm:$0xff]  ;;  %v236_v8 = vld [vmem:[%s3718_s2 + $0x40] sm:$0xff]  ;;  %v235_v9 = vld [vmem:[%s3718_s2 + $0x38] sm:$0xff]  ;;  %s3181_s4 = scalar_lea.vmem %s3717_s1, %s2169_s23 }
   0xe   : > { %2488 = vmatprep.subr.mxu0 %v242_v1  ;;  %v212_v5 = vld [vmem:[%s3125_s28] sm:$0xff]  ;;  %v234_v10 = vld [vmem:[%s3718_s2 + $0x30] sm:$0xff]  ;;  %v233_v11 = vld [vmem:[%s3718_s2 + $0x28] sm:$0xff]  ;;  %s194_s18 = scalar_lea.vmem %s3719_s3, %s2173_s6 }
   0xf   : > { %2489 = vmatpush3.msra.mxu0 %v242_v1  ;;  %2518 = vmatprep.mubr.f32.mxu0 %v212_v5  ;;  %v232_v12 = vld [vmem:[%s3718_s2 + $0x20] sm:$0xff]  ;;  %v231_v13 = vld [vmem:[%s3718_s2 + $0x18] sm:$0xff]  ;;  %v230_v14 = vld [vmem:[%s3718_s2 + $0x10] sm:$0xff] }
  0x10   : > { %2490 = vmatprep.subr.mxu0 %v241_v2  ;;  %v229_v15 = vld [vmem:[%s3718_s2 + $0x8] sm:$0xff]  ;;  %v228_v16 = vld [vmem:[%s3718_s2] sm:$0xff]  ;;  %v214_v18 = vld [vmem:[%s3125_s28 + $0x10] sm:$0xff] }
  0x11   : > { %2491 = vmatpush3.msra.mxu0 %v241_v2  ;;  %v213_v17 = vld [vmem:[%s3125_s28 + $0x8] sm:$0xff]  ;;  %v215_v19 = vld [vmem:[%s3125_s28 + $0x18] sm:$0xff]  ;;  %v216_v20 = vld [vmem:[%s3125_s28 + $0x20] sm:$0xff] }
  0x12   : > { %2492 = vmatprep.subr.mxu0 %v240_v3  ;;  %v217_v21 = vld [vmem:[%s3125_s28 + $0x28] sm:$0xff]  ;;  %v218_v22 = vld [vmem:[%s3125_s28 + $0x30] sm:$0xff]  ;;  %v219_v23 = vld [vmem:[%s3125_s28 + $0x38] sm:$0xff] }
  0x13   : > { %2493 = vmatpush3.msra.mxu0 %v240_v3  ;;  %v220_v24 = vld [vmem:[%s3125_s28 + $0x40] sm:$0xff]  ;;  %v221_v25 = vld [vmem:[%s3125_s28 + $0x48] sm:$0xff]  ;;  %v222_v26 = vld [vmem:[%s3125_s28 + $0x50] sm:$0xff] }
  0x14   : > { %2494 = vmatprep.subr.mxu0 %v239_v4  ;;  %v223_v27 = vld [vmem:[%s3125_s28 + $0x58] sm:$0xff]  ;;  %v224_v28 = vld [vmem:[%s3125_s28 + $0x60] sm:$0xff]  ;;  %v225_v29 = vld [vmem:[%s3125_s28 + $0x68] sm:$0xff] }
  0x15   : > { %2495 = vmatpush3.msra.mxu0 %v239_v4  ;;  %v226_v30 = vld [vmem:[%s3125_s28 + $0x70] sm:$0xff]  ;;  %v227_v31 = vld [vmem:[%s3125_s28 + $0x78] sm:$0xff]  ;;  %v3184_v32 = vld [vmem:[%s3181_s4] sm:$0xff] }
  0x16   : > { %2496 = vmatprep.subr.mxu0 %v238_v6  ;;  %2574 = vmatprep.mubr.f32.mxu1 %v3184_v32  ;;  %v259_v33 = vld [vmem:[%s3718_s2 + $0xf8] sm:$0xff]  ;;  %v258_v34 = vld [vmem:[%s3718_s2 + $0xf0] sm:$0xff]  ;;  %v257_v35 = vld [vmem:[%s3718_s2 + $0xe8] sm:$0xff] }
  0x17   : > { %2497 = vmatpush3.msra.mxu0 %v238_v6  ;;  %v256_v36 = vld [vmem:[%s3718_s2 + $0xe0] sm:$0xff]  ;;  %v255_v37 = vld [vmem:[%s3718_s2 + $0xd8] sm:$0xff]  ;;  %v254_v38 = vld [vmem:[%s3718_s2 + $0xd0] sm:$0xff] }
  0x18   : > { %2498 = vmatprep.subr.mxu0 %v237_v7  ;;  %v253_v39 = vld [vmem:[%s3718_s2 + $0xc8] sm:$0xff]  ;;  %v252_v40 = vld [vmem:[%s3718_s2 + $0xc0] sm:$0xff]  ;;  %v251_v41 = vld [vmem:[%s3718_s2 + $0xb8] sm:$0xff] }
  0x19   : > { %2499 = vmatpush3.msra.mxu0 %v237_v7  ;;  %v250_v42 = vld [vmem:[%s3718_s2 + $0xb0] sm:$0xff]  ;;  %v249_v43 = vld [vmem:[%s3718_s2 + $0xa8] sm:$0xff]  ;;  %v248_v44 = vld [vmem:[%s3718_s2 + $0xa0] sm:$0xff] }
  0x1a   : > { %2500 = vmatprep.subr.mxu0 %v236_v8  ;;  %v3224_v61 = vld [vmem:[%s3181_s4 + $0x8] sm:$0xff]  ;;  %v3227_v62 = vld [vmem:[%s3181_s4 + $0x10] sm:$0xff]  ;;  %v3232_v63 = vld [vmem:[%s3181_s4 + $0x18] sm:$0xff] }
  0x1b   : > { %2501 = vmatpush3.msra.mxu0 %v236_v8  ;;  %v3235_v0 = vld [vmem:[%s3181_s4 + $0x20] sm:$0xff]  ;;  %v3240_v1 = vld [vmem:[%s3181_s4 + $0x28] sm:$0xff]  ;;  %v3243_v2 = vld [vmem:[%s3181_s4 + $0x30] sm:$0xff] }
  0x1c   : > { %2502 = vmatprep.subr.mxu0 %v235_v9  ;;  %v3248_v3 = vld [vmem:[%s3181_s4 + $0x38] sm:$0xff]  ;;  %v3251_v4 = vld [vmem:[%s3181_s4 + $0x40] sm:$0xff]  ;;  %v3256_v5 = vld [vmem:[%s3181_s4 + $0x48] sm:$0xff] }
  0x1d   : > { %2503 = vmatpush3.msra.mxu0 %v235_v9  ;;  %v3259_v6 = vld [vmem:[%s3181_s4 + $0x50] sm:$0xff]  ;;  %v3264_v7 = vld [vmem:[%s3181_s4 + $0x58] sm:$0xff]  ;;  %v3267_v8 = vld [vmem:[%s3181_s4 + $0x60] sm:$0xff] }
  0x1e   : > { %2504 = vmatprep.subr.mxu0 %v234_v10  ;;  %v3272_v9 = vld [vmem:[%s3181_s4 + $0x68] sm:$0xff] }
  0x1f   : > { %2505 = vmatpush3.msra.mxu0 %v234_v10  ;;  %v3275_v10 = vld [vmem:[%s3181_s4 + $0x70] sm:$0xff] }
  0x20   : > { %2506 = vmatprep.subr.mxu0 %v233_v11 }
  0x21   : > { %2507 = vmatpush3.msra.mxu0 %v233_v11  ;;  %v3280_v11 = vld [vmem:[%s3181_s4 + $0x78] sm:$0xff] }
  0x22   : > { %2508 = vmatprep.subr.mxu0 %v232_v12 }
  0x23   : > { %2509 = vmatpush3.msra.mxu0 %v232_v12  ;;  %v247_v12 = vld [vmem:[%s3718_s2 + $0x98] sm:$0xff] }
  0x24   : > { %2510 = vmatprep.subr.mxu0 %v231_v13 }
  0x25   : > { %2511 = vmatpush3.msra.mxu0 %v231_v13  ;;  %v246_v13 = vld [vmem:[%s3718_s2 + $0x90] sm:$0xff] }
  0x26   : > { %2512 = vmatprep.subr.mxu0 %v230_v14 }
  0x27   : > { %2513 = vmatpush3.msra.mxu0 %v230_v14  ;;  %v245_v14 = vld [vmem:[%s3718_s2 + $0x88] sm:$0xff] }
  0x28   : > { %2514 = vmatprep.subr.mxu0 %v229_v15 }
  0x29   : > { %2515 = vmatpush3.msra.mxu0 %v229_v15  ;;  %v244_v15 = vld [vmem:[%s3718_s2 + $0x80] sm:$0xff] }
  0x2a   : > { %2516 = vmatprep.subr.mxu0 %v228_v16 }
  0x2b   : > { %2517 = vmatpush3.msra.mxu0 %v228_v16  ;;  %v486_v16 = vlaneseq }
  0x2c   : > { %2519 = vmatmul.mubr.f32.vlgmr.msra.gmra.mxu0 %v213_v17  ;;  %2598 = vmatprep.subr.mxu0 %v259_v33 }
  0x2d   : > { %2521 = vmatprep.mubr.f32.mxu0 %v214_v18  ;;  %2599 = vmatpush3.msra.mxu0 %v259_v33  ;;  %v3296_v17 = vshrl.u32 %v486_v16, 7 }
  0x2e   : > { %2600 = vmatprep.subr.mxu0 %v258_v34 }
  0x2f   : > { %2601 = vmatpush3.msra.mxu0 %v258_v34  ;;  %v488_v18 = vsub.s32 0, %v3296_v17 }
  0x30   : > { %2522 = vmatmul.mubr.f32.gmra.mxu0 %v215_v19  ;;  %2602 = vmatprep.subr.mxu0 %v257_v35  ;;  %v3302_v19 = vld [vmem:[%s3718_s2 + $0x380] sm:$0xff] }
  0x31   : > { %2524 = vmatprep.mubr.f32.mxu0 %v216_v20  ;;  %2603 = vmatpush3.msra.mxu0 %v257_v35  ;;  %v3305_v20 = vrot.slane %v3302_v19, %v488_v18 }
  0x32   : > { %2604 = vmatprep.subr.mxu0 %v256_v36 }
  0x33   : > { %2605 = vmatpush3.msra.mxu0 %v256_v36 }
  0x34   : > { %2525 = vmatmul.mubr.f32.gmra.mxu0 %v217_v21  ;;  %2606 = vmatprep.subr.mxu0 %v255_v37 }
  0x35   : > { %2527 = vmatprep.mubr.f32.mxu0 %v218_v22  ;;  %2607 = vmatpush3.msra.mxu0 %v255_v37 }
  0x36   : > { %2608 = vmatprep.subr.mxu0 %v254_v38 }
  0x37   : > { %2609 = vmatpush3.msra.mxu0 %v254_v38 }
  0x38   : > { %2528 = vmatmul.mubr.f32.gmra.mxu0 %v219_v23  ;;  %2610 = vmatprep.subr.mxu0 %v253_v39 }
  0x39   : > { %2530 = vmatprep.mubr.f32.mxu0 %v220_v24  ;;  %2611 = vmatpush3.msra.mxu0 %v253_v39 }
  0x3a   : > { %2612 = vmatprep.subr.mxu0 %v252_v40 }
  0x3b   : > { %2613 = vmatpush3.msra.mxu0 %v252_v40 }
  0x3c   : > { %2531 = vmatmul.mubr.f32.gmra.mxu0 %v221_v25  ;;  %2614 = vmatprep.subr.mxu0 %v251_v41 }
  0x3d   : > { %2533 = vmatprep.mubr.f32.mxu0 %v222_v26  ;;  %2615 = vmatpush3.msra.mxu0 %v251_v41 }
  0x3e   : > { %2616 = vmatprep.subr.mxu0 %v250_v42 }
  0x3f   : > { %2617 = vmatpush3.msra.mxu0 %v250_v42 }
  0x40   : > { %2534 = vmatmul.mubr.f32.gmra.mxu0 %v223_v27  ;;  %2618 = vmatprep.subr.mxu0 %v249_v43 }
  0x41   : > { %2536 = vmatprep.mubr.f32.mxu0 %v224_v28  ;;  %2619 = vmatpush3.msra.mxu0 %v249_v43 }
  0x42   : > { %2620 = vmatprep.subr.mxu0 %v248_v44 }
  0x43   : > { %2621 = vmatpush3.msra.mxu0 %v248_v44 }
  0x44   : > { %2537 = vmatmul.mubr.f32.gmra.mxu0 %v225_v29  ;;  %2622 = vmatprep.subr.mxu0 %v247_v12 }
  0x45   : > { %2539 = vmatprep.mubr.f32.mxu0 %v226_v30  ;;  %2623 = vmatpush3.msra.mxu0 %v247_v12 }
  0x46   : > { %2624 = vmatprep.subr.mxu0 %v246_v13 }
  0x47   : > { %2625 = vmatpush3.msra.mxu0 %v246_v13 }
  0x48   : > { %2540 = vmatmul.mubr.f32.gmra.mxu0 %v227_v31  ;;  %2626 = vmatprep.subr.mxu0 %v245_v14 }
  0x49   : > { %2627 = vmatpush3.msra.mxu0 %v245_v14 }
  0x4a   : > { %2628 = vmatprep.subr.mxu0 %v244_v15 }
  0x4b   : > { %2629 = vmatpush3.msra.mxu0 %v244_v15 }
  0xec   : > { %v2520_v45 = vpop.f32.mrf.mxu0 }
  0xee   : > { %v407_v46 = vpop.f32.mrf.mxu0 }
  0xf0   : > { %v2523_v47 = vpop.f32.mrf.mxu0 }
  0xf2   : > { %v417_v48 = vpop.f32.mrf.mxu0 }
  0xf4   : > { %v2526_v49 = vpop.f32.mrf.mxu0 }
  0xf6   : > { %v427_v50 = vpop.f32.mrf.mxu0 }
  0xf8   : > { %v2529_v51 = vpop.f32.mrf.mxu0 }
  0xfa   : > { %v437_v52 = vpop.f32.mrf.mxu0 }
  0xfc   : > { %v2532_v53 = vpop.f32.mrf.mxu0 }
  0xfe   : > { %v447_v54 = vpop.f32.mrf.mxu0 }
 0x100   : > { %v2535_v55 = vpop.f32.mrf.mxu0 }
 0x102   : > { %v457_v56 = vpop.f32.mrf.mxu0 }
 0x104   : > { %v2538_v57 = vpop.f32.mrf.mxu0 }
 0x106   : > { %v467_v58 = vpop.f32.mrf.mxu0 }
 0x108   : > { %v2541_v59 = vpop.f32.mrf.mxu0 }
 0x109   : > { %2542 = vmatprep.subr.mxu1 %v2541_v59 }
 0x10a   : > { %v477_v60 = vpop.f32.mrf.mxu0  ;;  %2543 = vmatpush3.msra.mxu1 %v2541_v59 }
 0x10b   : > { %2544 = vmatprep.subr.mxu1 %v477_v60 }
 0x10c   : > { %2545 = vmatpush3.msra.mxu1 %v477_v60 }
 0x10d   : > { %2546 = vmatprep.subr.mxu1 %v2538_v57 }
 0x10e   : > { %2547 = vmatpush3.msra.mxu1 %v2538_v57 }
 0x10f   : > { %2548 = vmatprep.subr.mxu1 %v467_v58 }
 0x110   : > { %2549 = vmatpush3.msra.mxu1 %v467_v58 }
 0x111   : > { %2550 = vmatprep.subr.mxu1 %v2535_v55 }
 0x112   : > { %2551 = vmatpush3.msra.mxu1 %v2535_v55 }
 0x113   : > { %2552 = vmatprep.subr.mxu1 %v457_v56 }
 0x114   : > { %2553 = vmatpush3.msra.mxu1 %v457_v56 }
 0x115   : > { %2554 = vmatprep.subr.mxu1 %v2532_v53 }
 0x116   : > { %2555 = vmatpush3.msra.mxu1 %v2532_v53 }
 0x117   : > { %2556 = vmatprep.subr.mxu1 %v447_v54 }
 0x118   : > { %2557 = vmatpush3.msra.mxu1 %v447_v54 }
 0x119   : > { %2558 = vmatprep.subr.mxu1 %v2529_v51 }
 0x11a   : > { %2559 = vmatpush3.msra.mxu1 %v2529_v51 }
 0x11b   : > { %2560 = vmatprep.subr.mxu1 %v437_v52 }
 0x11c   : > { %2561 = vmatpush3.msra.mxu1 %v437_v52 }
 0x11d   : > { %2562 = vmatprep.subr.mxu1 %v2526_v49 }
 0x11e   : > { %2563 = vmatpush3.msra.mxu1 %v2526_v49 }
 0x11f   : > { %2564 = vmatprep.subr.mxu1 %v427_v50 }
 0x120   : > { %2565 = vmatpush3.msra.mxu1 %v427_v50 }
 0x121   : > { %2566 = vmatprep.subr.mxu1 %v2523_v47 }
 0x122   : > { %2567 = vmatpush3.msra.mxu1 %v2523_v47 }
 0x123   : > { %2568 = vmatprep.subr.mxu1 %v417_v48 }
 0x124   : > { %2569 = vmatpush3.msra.mxu1 %v417_v48 }
 0x125   : > { %2570 = vmatprep.subr.mxu1 %v2520_v45 }
 0x126   : > { %2571 = vmatpush3.msra.mxu1 %v2520_v45 }
 0x127   : > { %2572 = vmatprep.subr.mxu1 %v407_v46 }
 0x128   : > { %2573 = vmatpush3.msra.mxu1 %v407_v46 }
 0x129   : > { %2575 = vmatmul.mubr.f32.vlgmr.msra.gmra.mxu1 %v3224_v61 }
 0x12a   : > { %2577 = vmatprep.mubr.f32.mxu1 %v3227_v62 }
 0x12d   : > { %2578 = vmatmul.mubr.f32.gmra.mxu1 %v3232_v63 }
 0x12e   : > { %2580 = vmatprep.mubr.f32.mxu1 %v3235_v0 }
 0x131   : > { %2581 = vmatmul.mubr.f32.gmra.mxu1 %v3240_v1 }
 0x132   : > { %2583 = vmatprep.mubr.f32.mxu1 %v3243_v2 }
 0x135   : > { %2584 = vmatmul.mubr.f32.gmra.mxu1 %v3248_v3 }
 0x136   : > { %2586 = vmatprep.mubr.f32.mxu1 %v3251_v4 }
 0x139   : > { %2587 = vmatmul.mubr.f32.gmra.mxu1 %v3256_v5 }
 0x13a   : > { %2589 = vmatprep.mubr.f32.mxu1 %v3259_v6 }
 0x13d   : > { %2590 = vmatmul.mubr.f32.gmra.mxu1 %v3264_v7 }
 0x13e   : > { %2592 = vmatprep.mubr.f32.mxu1 %v3267_v8 }
 0x141   : > { %2593 = vmatmul.mubr.f32.gmra.mxu1 %v3272_v9 }
 0x142   : > { %2595 = vmatprep.mubr.f32.mxu1 %v3275_v10 }
 0x145   : > { %2596 = vmatmul.mubr.f32.gmra.mxu1 %v3280_v11 }
 0x146   : > { %2686 = vmatprep.mubr.f32.mxu1 %v3184_v32 }
 0x1e9   : > { %v2576_v21 = vpop.f32.mrf.mxu1 }
 0x1ea   : > { %v562_v22 = vadd.f32 %v2576_v21, %v3305_v20 }
 0x1eb   : > { %v556_v23 = vpop.f32.mrf.mxu1 }
 0x1ec   : > { %v557_v24 = vadd.f32 %v556_v23, %v3305_v20  ;;  %v652_v25 = vmul.f32 0.01, %v562_v22  ;;  %vm636_vm0 = vcmp.gt.f32.partialorder %v562_v22, 0.0 }
 0x1ed   : > { %v2579_v26 = vpop.f32.mrf.mxu1 }
 0x1ee   : > { %v651_v27 = vmul.f32 0.01, %v557_v24  ;;  %v572_v28 = vadd.f32 %v2579_v26, %v3305_v20  ;;  %vm635_vm1 = vcmp.gt.f32.partialorder %v557_v24, 0.0  ;;  %v668_v33 = vsel %vm636_vm0, %v562_v22, %v652_v25 }
 0x1ef   : > { %v566_v29 = vpop.f32.mrf.mxu1 }
 0x1f0   : > { %v567_v30 = vadd.f32 %v566_v29, %v3305_v20  ;;  %v667_v31 = vsel %vm635_vm1, %v557_v24, %v651_v27  ;;  %v654_v34 = vmul.f32 0.01, %v572_v28  ;;  %vm638_vm3 = vcmp.gt.f32.partialorder %v572_v28, 0.0 }
 0x1f1   : > { %v2582_v35 = vpop.f32.mrf.mxu1  ;;  %2630 = vmatprep.mubr.f32.mxu0 %v667_v31 }
 0x1f2   : > { %v653_v36 = vmul.f32 0.01, %v567_v30  ;;  %v582_v37 = vadd.f32 %v2582_v35, %v3305_v20  ;;  %2631 = vmatmul.mubr.f32.vlgmr.msra.gmra.mxu0 %v668_v33  ;;  %vm637_vm2 = vcmp.gt.f32.partialorder %v567_v30, 0.0  ;;  %v670_v43 = vsel %vm638_vm3, %v572_v28, %v654_v34 }
 0x1f3   : > { %v576_v38 = vpop.f32.mrf.mxu1 }
 0x1f4   : > { %v577_v39 = vadd.f32 %v576_v38, %v3305_v20  ;;  %v669_v40 = vsel %vm637_vm2, %v567_v30, %v653_v36  ;;  %v656_v41 = vmul.f32 0.01, %v582_v37  ;;  %vm640_vm5 = vcmp.gt.f32.partialorder %v582_v37, 0.0 }
 0x1f5   : > { %v2585_v42 = vpop.f32.mrf.mxu1  ;;  %2633 = vmatprep.mubr.f32.mxu0 %v669_v40 }
 0x1f6   : > { %v655_v44 = vmul.f32 0.01, %v577_v39  ;;  %v592_v45 = vadd.f32 %v2585_v42, %v3305_v20  ;;  %2634 = vmatmul.mubr.f32.gmra.mxu0 %v670_v43  ;;  %vm639_vm4 = vcmp.gt.f32.partialorder %v577_v39, 0.0  ;;  %v672_v51 = vsel %vm640_vm5, %v582_v37, %v656_v41  ;;  %v275_v41 = vld [vmem:[%s3718_s2 + $0x178] sm:$0xff]  ;;  %v273_v42 = vld [vmem:[%s3718_s2 + $0x168] sm:$0xff]  ;;  %v272_v43 = vld [vmem:[%s3718_s2 + $0x160] sm:$0xff] }
 0x1f7   : > { %v586_v46 = vpop.f32.mrf.mxu1  ;;  %2710 = vmatprep.subr.mxu0 %v275_v41 }
 0x1f8   : > { %v587_v47 = vadd.f32 %v586_v46, %v3305_v20  ;;  %v671_v48 = vsel %vm639_vm4, %v577_v39, %v655_v44  ;;  %v658_v49 = vmul.f32 0.01, %v592_v45  ;;  %vm642_vm7 = vcmp.gt.f32.partialorder %v592_v45, 0.0  ;;  %2711 = vmatpush3.msra.mxu0 %v275_v41  ;;  %v271_v44 = vld [vmem:[%s3718_s2 + $0x158] sm:$0xff]  ;;  %v269_v46 = vld [vmem:[%s3718_s2 + $0x148] sm:$0xff] }
 0x1f9   : > { %v2588_v50 = vpop.f32.mrf.mxu1  ;;  %2636 = vmatprep.mubr.f32.mxu0 %v671_v48  ;;  %v267_v48 = vld [vmem:[%s3718_s2 + $0x138] sm:$0xff] }
 0x1fa   : > { %v657_v52 = vmul.f32 0.01, %v587_v47  ;;  %v602_v53 = vadd.f32 %v2588_v50, %v3305_v20  ;;  %2637 = vmatmul.mubr.f32.gmra.mxu0 %v672_v51  ;;  %vm641_vm6 = vcmp.gt.f32.partialorder %v587_v47, 0.0  ;;  %v674_v59 = vsel %vm642_vm7, %v592_v45, %v658_v49  ;;  %v270_v45 = vld [vmem:[%s3718_s2 + $0x150] sm:$0xff]  ;;  %v265_v50 = vld [vmem:[%s3718_s2 + $0x128] sm:$0xff]  ;;  %v264_v51 = vld [vmem:[%s3718_s2 + $0x120] sm:$0xff] }
 0x1fb   : > { %v596_v54 = vpop.f32.mrf.mxu1  ;;  %v266_v49 = vld [vmem:[%s3718_s2 + $0x130] sm:$0xff] }
 0x1fc   : > { %v597_v55 = vadd.f32 %v596_v54, %v3305_v20  ;;  %v673_v56 = vsel %vm641_vm6, %v587_v47, %v657_v52  ;;  %v660_v57 = vmul.f32 0.01, %v602_v53  ;;  %vm644_vm9 = vcmp.gt.f32.partialorder %v602_v53, 0.0  ;;  %v268_v47 = vld [vmem:[%s3718_s2 + $0x140] sm:$0xff] }
 0x1fd   : > { %v2591_v58 = vpop.f32.mrf.mxu1  ;;  %2639 = vmatprep.mubr.f32.mxu0 %v673_v56 }
 0x1fe   : > { %v659_v60 = vmul.f32 0.01, %v597_v55  ;;  %v612_v12 = vadd.f32 %v2591_v58, %v3305_v20  ;;  %2640 = vmatmul.mubr.f32.gmra.mxu0 %v674_v59  ;;  %vm643_vm8 = vcmp.gt.f32.partialorder %v597_v55, 0.0  ;;  %v676_v21 = vsel %vm644_vm9, %v602_v53, %v660_v57 }
 0x1ff   : > { %v606_v13 = vpop.f32.mrf.mxu1 }
 0x200   : > { %v607_v14 = vadd.f32 %v606_v13, %v3305_v20  ;;  %v675_v15 = vsel %vm643_vm8, %v597_v55, %v659_v60  ;;  %v662_v16 = vmul.f32 0.01, %v612_v12  ;;  %vm646_vm11 = vcmp.gt.f32.partialorder %v612_v12, 0.0 }
 0x201   : > { %v2594_v18 = vpop.f32.mrf.mxu1  ;;  %2642 = vmatprep.mubr.f32.mxu0 %v675_v15 }
 0x202   : > { %v661_v22 = vmul.f32 0.01, %v607_v14  ;;  %v622_v23 = vadd.f32 %v2594_v18, %v3305_v20  ;;  %2643 = vmatmul.mubr.f32.gmra.mxu0 %v676_v21  ;;  %vm645_vm10 = vcmp.gt.f32.partialorder %v607_v14, 0.0  ;;  %v678_v29 = vsel %vm646_vm11, %v612_v12, %v662_v16 }
 0x203   : > { %v616_v24 = vpop.f32.mrf.mxu1 }
 0x204   : > { %v617_v25 = vadd.f32 %v616_v24, %v3305_v20  ;;  %v677_v26 = vsel %vm645_vm10, %v607_v14, %v661_v22  ;;  %v664_v27 = vmul.f32 0.01, %v622_v23  ;;  %vm648_vm13 = vcmp.gt.f32.partialorder %v622_v23, 0.0  ;;  %v263_v22 = vld [vmem:[%s3718_s2 + $0x118] sm:$0xff]  ;;  %v261_v24 = vld [vmem:[%s3718_s2 + $0x108] sm:$0xff] }
 0x205   : > { %v2597_v28 = vpop.f32.mrf.mxu1  ;;  %2645 = vmatprep.mubr.f32.mxu0 %v677_v26 }
 0x206   : > { %v663_v30 = vmul.f32 0.01, %v617_v25  ;;  %v632_v31 = vadd.f32 %v2597_v28, %v3305_v20  ;;  %2646 = vmatmul.mubr.f32.gmra.mxu0 %v678_v29  ;;  %vm647_vm12 = vcmp.gt.f32.partialorder %v617_v25, 0.0  ;;  %v680_v37 = vsel %vm648_vm13, %v622_v23, %v664_v27  ;;  %v262_v23 = vld [vmem:[%s3718_s2 + $0x110] sm:$0xff] }
 0x207   : > { %v626_v33 = vpop.f32.mrf.mxu1 }
 0x208   : > { %v627_v34 = vadd.f32 %v626_v33, %v3305_v20  ;;  %v679_v35 = vsel %vm647_vm12, %v617_v25, %v663_v30  ;;  %v666_v36 = vmul.f32 0.01, %v632_v31  ;;  %vm650_vm15 = vcmp.gt.f32.partialorder %v632_v31, 0.0  ;;  %v274_v20 = vld [vmem:[%s3718_s2 + $0x170] sm:$0xff] }
 0x209   : > { %2648 = vmatprep.mubr.f32.mxu0 %v679_v35  ;;  %2712 = vmatprep.subr.mxu0 %v274_v20  ;;  %v830_v25 = vsub.s32 1, %v3296_v17 }
 0x20a   : > { %v665_v38 = vmul.f32 0.01, %v627_v34  ;;  %2649 = vmatmul.mubr.f32.gmra.mxu0 %v680_v37  ;;  %vm649_vm14 = vcmp.gt.f32.partialorder %v627_v34, 0.0  ;;  %v682_v40 = vsel %vm650_vm15, %v632_v31, %v666_v36 }
 0x20b   : > { %2713 = vmatpush3.msra.mxu0 %v274_v20  ;;  %v3389_v26 = vrot.slane %v3302_v19, %v830_v25 }
 0x20c   : > { %v681_v39 = vsel %vm649_vm14, %v627_v34, %v665_v38  ;;  %2714 = vmatprep.subr.mxu0 %v273_v42 }
 0x20d   : > { %2651 = vmatprep.mubr.f32.mxu0 %v681_v39  ;;  %2715 = vmatpush3.msra.mxu0 %v273_v42 }
 0x20e   : > { %2652 = vmatmul.mubr.f32.gmra.mxu0 %v682_v40  ;;  %2716 = vmatprep.subr.mxu0 %v272_v43 }
 0x20f   : > { %2717 = vmatpush3.msra.mxu0 %v272_v43 }
 0x210   : > { %2718 = vmatprep.subr.mxu0 %v271_v44 }
 0x211   : > { %2719 = vmatpush3.msra.mxu0 %v271_v44 }
 0x212   : > { %2720 = vmatprep.subr.mxu0 %v270_v45 }
 0x213   : > { %2721 = vmatpush3.msra.mxu0 %v270_v45 }
 0x214   : > { %2722 = vmatprep.subr.mxu0 %v269_v46 }
 0x215   : > { %2723 = vmatpush3.msra.mxu0 %v269_v46 }
 0x216   : > { %2724 = vmatprep.subr.mxu0 %v268_v47 }
 0x217   : > { %2725 = vmatpush3.msra.mxu0 %v268_v47 }
 0x218   : > { %2726 = vmatprep.subr.mxu0 %v267_v48 }
 0x219   : > { %2727 = vmatpush3.msra.mxu0 %v267_v48 }
 0x21a   : > { %2728 = vmatprep.subr.mxu0 %v266_v49 }
 0x21b   : > { %2729 = vmatpush3.msra.mxu0 %v266_v49 }
 0x21c   : > { %2730 = vmatprep.subr.mxu0 %v265_v50 }
 0x21d   : > { %2731 = vmatpush3.msra.mxu0 %v265_v50 }
 0x21e   : > { %2732 = vmatprep.subr.mxu0 %v264_v51 }
 0x21f   : > { %2733 = vmatpush3.msra.mxu0 %v264_v51 }
 0x220   : > { %2734 = vmatprep.subr.mxu0 %v263_v22 }
 0x221   : > { %2735 = vmatpush3.msra.mxu0 %v263_v22 }
 0x222   : > { %2736 = vmatprep.subr.mxu0 %v262_v23 }
 0x223   : > { %2737 = vmatpush3.msra.mxu0 %v262_v23 }
 0x224   : > { %2738 = vmatprep.subr.mxu0 %v261_v24 }
 0x225   : > { %2739 = vmatpush3.msra.mxu0 %v261_v24 }
 0x2b2   : > { %v2632_v52 = vpop.f32.mrf.mxu0 }
 0x2b4   : > { %v749_v53 = vpop.f32.mrf.mxu0 }
 0x2b6   : > { %v2635_v54 = vpop.f32.mrf.mxu0 }
 0x2b8   : > { %v759_v55 = vpop.f32.mrf.mxu0 }
 0x2ba   : > { %v2638_v56 = vpop.f32.mrf.mxu0 }
 0x2bc   : > { %v769_v57 = vpop.f32.mrf.mxu0 }
 0x2be   : > { %v2641_v58 = vpop.f32.mrf.mxu0 }
 0x2c0   : > { %v779_v59 = vpop.f32.mrf.mxu0 }
 0x2c2   : > { %v2644_v60 = vpop.f32.mrf.mxu0 }
 0x2c4   : > { %v789_v12 = vpop.f32.mrf.mxu0 }
 0x2c6   : > { %v2647_v13 = vpop.f32.mrf.mxu0 }
 0x2c8   : > { %v799_v14 = vpop.f32.mrf.mxu0 }
 0x2ca   : > { %v2650_v15 = vpop.f32.mrf.mxu0 }
 0x2cc   : > { %v809_v16 = vpop.f32.mrf.mxu0 }
 0x2ce   : > { %v2653_v18 = vpop.f32.mrf.mxu0 }
 0x2cf   : > { %2654 = vmatprep.subr.mxu1 %v2653_v18 }
 0x2d0   : > { %v819_v21 = vpop.f32.mrf.mxu0  ;;  %2655 = vmatpush3.msra.mxu1 %v2653_v18 }
 0x2d1   : > { %2656 = vmatprep.subr.mxu1 %v819_v21 }
 0x2d2   : > { %2657 = vmatpush3.msra.mxu1 %v819_v21 }
 0x2d3   : > { %2658 = vmatprep.subr.mxu1 %v2650_v15 }
 0x2d4   : > { %2659 = vmatpush3.msra.mxu1 %v2650_v15 }
 0x2d5   : > { %2660 = vmatprep.subr.mxu1 %v809_v16 }
 0x2d6   : > { %2661 = vmatpush3.msra.mxu1 %v809_v16 }
 0x2d7   : > { %2662 = vmatprep.subr.mxu1 %v2647_v13 }
 0x2d8   : > { %2663 = vmatpush3.msra.mxu1 %v2647_v13 }
 0x2d9   : > { %2664 = vmatprep.subr.mxu1 %v799_v14 }
 0x2da   : > { %2665 = vmatpush3.msra.mxu1 %v799_v14 }
 0x2db   : > { %2666 = vmatprep.subr.mxu1 %v2644_v60 }
 0x2dc   : > { %2667 = vmatpush3.msra.mxu1 %v2644_v60 }
 0x2dd   : > { %2668 = vmatprep.subr.mxu1 %v789_v12 }
 0x2de   : > { %2669 = vmatpush3.msra.mxu1 %v789_v12 }
 0x2df   : > { %2670 = vmatprep.subr.mxu1 %v2641_v58 }
 0x2e0   : > { %2671 = vmatpush3.msra.mxu1 %v2641_v58 }
 0x2e1   : > { %2672 = vmatprep.subr.mxu1 %v779_v59 }
 0x2e2   : > { %2673 = vmatpush3.msra.mxu1 %v779_v59 }
 0x2e3   : > { %2674 = vmatprep.subr.mxu1 %v2638_v56 }
 0x2e4   : > { %2675 = vmatpush3.msra.mxu1 %v2638_v56 }
 0x2e5   : > { %2676 = vmatprep.subr.mxu1 %v769_v57 }
 0x2e6   : > { %2677 = vmatpush3.msra.mxu1 %v769_v57 }
 0x2e7   : > { %2678 = vmatprep.subr.mxu1 %v2635_v54 }
 0x2e8   : > { %2679 = vmatpush3.msra.mxu1 %v2635_v54 }
 0x2e9   : > { %2680 = vmatprep.subr.mxu1 %v759_v55 }
 0x2ea   : > { %2681 = vmatpush3.msra.mxu1 %v759_v55 }
 0x2eb   : > { %2682 = vmatprep.subr.mxu1 %v2632_v52 }
 0x2ec   : > { %2683 = vmatpush3.msra.mxu1 %v2632_v52 }
 0x2ed   : > { %2684 = vmatprep.subr.mxu1 %v749_v53 }
 0x2ee   : > { %2685 = vmatpush3.msra.mxu1 %v749_v53 }
 0x2ef   : > { %2687 = vmatmul.mubr.f32.vlgmr.msra.gmra.mxu1 %v3224_v61 }
 0x2f0   : > { %2689 = vmatprep.mubr.f32.mxu1 %v3227_v62 }
 0x2f3   : > { %2690 = vmatmul.mubr.f32.gmra.mxu1 %v3232_v63 }
 0x2f4   : > { %2692 = vmatprep.mubr.f32.mxu1 %v3235_v0 }
 0x2f7   : > { %2693 = vmatmul.mubr.f32.gmra.mxu1 %v3240_v1 }
 0x2f8   : > { %2695 = vmatprep.mubr.f32.mxu1 %v3243_v2 }
 0x2fb   : > { %2696 = vmatmul.mubr.f32.gmra.mxu1 %v3248_v3 }
 0x2fc   : > { %2698 = vmatprep.mubr.f32.mxu1 %v3251_v4 }
 0x2ff   : > { %2699 = vmatmul.mubr.f32.gmra.mxu1 %v3256_v5 }
 0x300   : > { %2701 = vmatprep.mubr.f32.mxu1 %v3259_v6 }
 0x303   : > { %2702 = vmatmul.mubr.f32.gmra.mxu1 %v3264_v7 }
 0x304   : > { %2704 = vmatprep.mubr.f32.mxu1 %v3267_v8 }
 0x307   : > { %2705 = vmatmul.mubr.f32.gmra.mxu1 %v3272_v9 }
 0x308   : > { %2707 = vmatprep.mubr.f32.mxu1 %v3275_v10 }
 0x30b   : > { %2708 = vmatmul.mubr.f32.gmra.mxu1 %v3280_v11 }
 0x30c   : > { %2798 = vmatprep.mubr.f32.mxu1 %v3184_v32  ;;  %v260_v32 = vld [vmem:[%s3718_s2 + $0x100] sm:$0xff] }
 0x30d   : > { %2740 = vmatprep.subr.mxu0 %v260_v32 }
 0x30e   : > { %2741 = vmatpush3.msra.mxu0 %v260_v32 }
 0x3af   : > { %v2688_v27 = vpop.f32.mrf.mxu1 }
 0x3b0   : > { %v904_v28 = vadd.f32 %v2688_v27, %v3389_v26 }
 0x3b1   : > { %v898_v29 = vpop.f32.mrf.mxu1 }
 0x3b2   : > { %v899_v30 = vadd.f32 %v898_v29, %v3389_v26  ;;  %v994_v31 = vmul.f32 0.01, %v904_v28  ;;  %vm978_vm0 = vcmp.gt.f32.partialorder %v904_v28, 0.0 }
 0x3b3   : > { %v2691_v33 = vpop.f32.mrf.mxu1 }
 0x3b4   : > { %v993_v34 = vmul.f32 0.01, %v899_v30  ;;  %v914_v35 = vadd.f32 %v2691_v33, %v3389_v26  ;;  %vm977_vm1 = vcmp.gt.f32.partialorder %v899_v30, 0.0  ;;  %v1010_v39 = vsel %vm978_vm0, %v904_v28, %v994_v31 }
 0x3b5   : > { %v908_v36 = vpop.f32.mrf.mxu1 }
 0x3b6   : > { %v909_v37 = vadd.f32 %v908_v36, %v3389_v26  ;;  %v1009_v38 = vsel %vm977_vm1, %v899_v30, %v993_v34  ;;  %v996_v40 = vmul.f32 0.01, %v914_v35  ;;  %vm980_vm3 = vcmp.gt.f32.partialorder %v914_v35, 0.0 }
 0x3b7   : > { %v2694_v41 = vpop.f32.mrf.mxu1  ;;  %2742 = vmatprep.mubr.f32.mxu0 %v1009_v38 }
 0x3b8   : > { %v995_v20 = vmul.f32 0.01, %v909_v37  ;;  %v924_v42 = vadd.f32 %v2694_v41, %v3389_v26  ;;  %2743 = vmatmul.mubr.f32.vlgmr.msra.gmra.mxu0 %v1010_v39  ;;  %vm979_vm2 = vcmp.gt.f32.partialorder %v909_v37, 0.0  ;;  %v1012_v48 = vsel %vm980_vm3, %v914_v35, %v996_v40 }
 0x3b9   : > { %v918_v43 = vpop.f32.mrf.mxu1 }
 0x3ba   : > { %v919_v44 = vadd.f32 %v918_v43, %v3389_v26  ;;  %v1011_v45 = vsel %vm979_vm2, %v909_v37, %v995_v20  ;;  %v998_v46 = vmul.f32 0.01, %v924_v42  ;;  %vm982_vm5 = vcmp.gt.f32.partialorder %v924_v42, 0.0 }
 0x3bb   : > { %v2697_v47 = vpop.f32.mrf.mxu1  ;;  %2745 = vmatprep.mubr.f32.mxu0 %v1011_v45  ;;  %v291_v45 = vld [vmem:[%s3718_s2 + $0x1f8] sm:$0xff] }
 0x3bc   : > { %v997_v49 = vmul.f32 0.01, %v919_v44  ;;  %v934_v50 = vadd.f32 %v2697_v47, %v3389_v26  ;;  %2746 = vmatmul.mubr.f32.gmra.mxu0 %v1012_v48  ;;  %vm981_vm4 = vcmp.gt.f32.partialorder %v919_v44, 0.0  ;;  %v1014_v56 = vsel %vm982_vm5, %v924_v42, %v998_v46  ;;  %2822 = vmatprep.subr.mxu0 %v291_v45  ;;  %v289_v46 = vld [vmem:[%s3718_s2 + $0x1e8] sm:$0xff]  ;;  %v288_v47 = vld [vmem:[%s3718_s2 + $0x1e0] sm:$0xff]  ;;  %v287_v48 = vld [vmem:[%s3718_s2 + $0x1d8] sm:$0xff] }
 0x3bd   : > { %v928_v51 = vpop.f32.mrf.mxu1  ;;  %2823 = vmatpush3.msra.mxu0 %v291_v45 }
 0x3be   : > { %v929_v52 = vadd.f32 %v928_v51, %v3389_v26  ;;  %v1013_v53 = vsel %vm981_vm4, %v919_v44, %v997_v49  ;;  %v1000_v54 = vmul.f32 0.01, %v934_v50  ;;  %vm984_vm7 = vcmp.gt.f32.partialorder %v934_v50, 0.0  ;;  %v286_v49 = vld [vmem:[%s3718_s2 + $0x1d0] sm:$0xff]  ;;  %v284_v51 = vld [vmem:[%s3718_s2 + $0x1c0] sm:$0xff] }
 0x3bf   : > { %v2700_v55 = vpop.f32.mrf.mxu1  ;;  %2748 = vmatprep.mubr.f32.mxu0 %v1013_v53  ;;  %v282_v53 = vld [vmem:[%s3718_s2 + $0x1b0] sm:$0xff] }
 0x3c0   : > { %v999_v57 = vmul.f32 0.01, %v929_v52  ;;  %v944_v58 = vadd.f32 %v2700_v55, %v3389_v26  ;;  %2749 = vmatmul.mubr.f32.gmra.mxu0 %v1014_v56  ;;  %vm983_vm6 = vcmp.gt.f32.partialorder %v929_v52, 0.0  ;;  %v1016_v15 = vsel %vm984_vm7, %v934_v50, %v1000_v54  ;;  %v285_v50 = vld [vmem:[%s3718_s2 + $0x1c8] sm:$0xff]  ;;  %v280_v55 = vld [vmem:[%s3718_s2 + $0x1a0] sm:$0xff] }
 0x3c1   : > { %v938_v59 = vpop.f32.mrf.mxu1  ;;  %v281_v54 = vld [vmem:[%s3718_s2 + $0x1a8] sm:$0xff] }
 0x3c2   : > { %v939_v60 = vadd.f32 %v938_v59, %v3389_v26  ;;  %v1015_v12 = vsel %vm983_vm6, %v929_v52, %v999_v57  ;;  %v1002_v13 = vmul.f32 0.01, %v944_v58  ;;  %vm986_vm9 = vcmp.gt.f32.partialorder %v944_v58, 0.0  ;;  %v283_v52 = vld [vmem:[%s3718_s2 + $0x1b8] sm:$0xff] }
 0x3c3   : > { %v2703_v14 = vpop.f32.mrf.mxu1  ;;  %2751 = vmatprep.mubr.f32.mxu0 %v1015_v12 }
 0x3c4   : > { %v1001_v16 = vmul.f32 0.01, %v939_v60  ;;  %v954_v18 = vadd.f32 %v2703_v14, %v3389_v26  ;;  %2752 = vmatmul.mubr.f32.gmra.mxu0 %v1016_v15  ;;  %vm985_vm8 = vcmp.gt.f32.partialorder %v939_v60, 0.0  ;;  %v1018_v25 = vsel %vm986_vm9, %v944_v58, %v1002_v13 }
 0x3c5   : > { %v948_v21 = vpop.f32.mrf.mxu1 }
 0x3c6   : > { %v949_v22 = vadd.f32 %v948_v21, %v3389_v26  ;;  %v1017_v23 = vsel %vm985_vm8, %v939_v60, %v1001_v16  ;;  %v1004_v24 = vmul.f32 0.01, %v954_v18  ;;  %vm988_vm11 = vcmp.gt.f32.partialorder %v954_v18, 0.0 }
 0x3c7   : > { %v2706_v32 = vpop.f32.mrf.mxu1  ;;  %2754 = vmatprep.mubr.f32.mxu0 %v1017_v23 }
 0x3c8   : > { %v1003_v27 = vmul.f32 0.01, %v949_v22  ;;  %v964_v28 = vadd.f32 %v2706_v32, %v3389_v26  ;;  %2755 = vmatmul.mubr.f32.gmra.mxu0 %v1018_v25  ;;  %vm987_vm10 = vcmp.gt.f32.partialorder %v949_v22, 0.0  ;;  %v1020_v35 = vsel %vm988_vm11, %v954_v18, %v1004_v24 }
 0x3c9   : > { %v958_v29 = vpop.f32.mrf.mxu1 }
 0x3ca   : > { %v959_v30 = vadd.f32 %v958_v29, %v3389_v26  ;;  %v1019_v31 = vsel %vm987_vm10, %v949_v22, %v1003_v27  ;;  %v1006_v33 = vmul.f32 0.01, %v964_v28  ;;  %vm990_vm13 = vcmp.gt.f32.partialorder %v964_v28, 0.0 }
 0x3cb   : > { %v2709_v34 = vpop.f32.mrf.mxu1  ;;  %2757 = vmatprep.mubr.f32.mxu0 %v1019_v31 }
 0x3cc   : > { %v1005_v36 = vmul.f32 0.01, %v959_v30  ;;  %v974_v37 = vadd.f32 %v2709_v34, %v3389_v26  ;;  %2758 = vmatmul.mubr.f32.gmra.mxu0 %v1020_v35  ;;  %vm989_vm12 = vcmp.gt.f32.partialorder %v959_v30, 0.0  ;;  %v1022_v20 = vsel %vm990_vm13, %v964_v28, %v1006_v33 }
 0x3cd   : > { %v968_v38 = vpop.f32.mrf.mxu1 }
 0x3ce   : > { %v969_v39 = vadd.f32 %v968_v38, %v3389_v26  ;;  %v1021_v40 = vsel %vm989_vm12, %v959_v30, %v1005_v36  ;;  %v1008_v41 = vmul.f32 0.01, %v974_v37  ;;  %vm992_vm15 = vcmp.gt.f32.partialorder %v974_v37, 0.0  ;;  %v290_v26 = vld [vmem:[%s3718_s2 + $0x1f0] sm:$0xff] }
 0x3cf   : > { %2760 = vmatprep.mubr.f32.mxu0 %v1021_v40  ;;  %2824 = vmatprep.subr.mxu0 %v290_v26 }
 0x3d0   : > { %v1007_v42 = vmul.f32 0.01, %v969_v39  ;;  %2761 = vmatmul.mubr.f32.gmra.mxu0 %v1022_v20  ;;  %vm991_vm14 = vcmp.gt.f32.partialorder %v969_v39, 0.0  ;;  %v1024_v44 = vsel %vm992_vm15, %v974_v37, %v1008_v41 }
 0x3d1   : > { %2825 = vmatpush3.msra.mxu0 %v290_v26 }
 0x3d2   : > { %v1023_v43 = vsel %vm991_vm14, %v969_v39, %v1007_v42  ;;  %2826 = vmatprep.subr.mxu0 %v289_v46 }
 0x3d3   : > { %2763 = vmatprep.mubr.f32.mxu0 %v1023_v43  ;;  %2827 = vmatpush3.msra.mxu0 %v289_v46 }
 0x3d4   : > { %2764 = vmatmul.mubr.f32.gmra.mxu0 %v1024_v44  ;;  %2828 = vmatprep.subr.mxu0 %v288_v47 }
 0x3d5   : > { %2829 = vmatpush3.msra.mxu0 %v288_v47 }
 0x3d6   : > { %2830 = vmatprep.subr.mxu0 %v287_v48 }
 0x3d7   : > { %2831 = vmatpush3.msra.mxu0 %v287_v48 }
 0x3d8   : > { %2832 = vmatprep.subr.mxu0 %v286_v49 }
 0x3d9   : > { %2833 = vmatpush3.msra.mxu0 %v286_v49 }
 0x3da   : > { %2834 = vmatprep.subr.mxu0 %v285_v50 }
 0x3db   : > { %2835 = vmatpush3.msra.mxu0 %v285_v50 }
 0x3dc   : > { %2836 = vmatprep.subr.mxu0 %v284_v51 }
 0x3dd   : > { %2837 = vmatpush3.msra.mxu0 %v284_v51 }
 0x3de   : > { %2838 = vmatprep.subr.mxu0 %v283_v52 }
 0x3df   : > { %2839 = vmatpush3.msra.mxu0 %v283_v52 }
 0x3e0   : > { %2840 = vmatprep.subr.mxu0 %v282_v53 }
 0x3e1   : > { %2841 = vmatpush3.msra.mxu0 %v282_v53 }
 0x3e2   : > { %2842 = vmatprep.subr.mxu0 %v281_v54 }
 0x3e3   : > { %2843 = vmatpush3.msra.mxu0 %v281_v54 }
 0x3e4   : > { %2844 = vmatprep.subr.mxu0 %v280_v55 }
 0x3e5   : > { %2845 = vmatpush3.msra.mxu0 %v280_v55 }
 0x478   : > { %v2744_v56 = vpop.f32.mrf.mxu0 }
 0x47a   : > { %v1091_v57 = vpop.f32.mrf.mxu0 }
 0x47c   : > { %v2747_v58 = vpop.f32.mrf.mxu0 }
 0x47e   : > { %v1101_v59 = vpop.f32.mrf.mxu0 }
 0x480   : > { %v2750_v60 = vpop.f32.mrf.mxu0 }
 0x482   : > { %v1111_v12 = vpop.f32.mrf.mxu0 }
 0x484   : > { %v2753_v13 = vpop.f32.mrf.mxu0 }
 0x486   : > { %v1121_v14 = vpop.f32.mrf.mxu0 }
 0x488   : > { %v2756_v15 = vpop.f32.mrf.mxu0 }
 0x48a   : > { %v1131_v16 = vpop.f32.mrf.mxu0 }
 0x48c   : > { %v2759_v18 = vpop.f32.mrf.mxu0 }
 0x48e   : > { %v1141_v21 = vpop.f32.mrf.mxu0 }
 0x490   : > { %v2762_v22 = vpop.f32.mrf.mxu0 }
 0x492   : > { %v1151_v23 = vpop.f32.mrf.mxu0 }
 0x494   : > { %v2765_v24 = vpop.f32.mrf.mxu0 }
 0x495   : > { %2766 = vmatprep.subr.mxu1 %v2765_v24 }
 0x496   : > { %v1161_v32 = vpop.f32.mrf.mxu0  ;;  %2767 = vmatpush3.msra.mxu1 %v2765_v24 }
 0x497   : > { %2768 = vmatprep.subr.mxu1 %v1161_v32 }
 0x498   : > { %2769 = vmatpush3.msra.mxu1 %v1161_v32 }
 0x499   : > { %2770 = vmatprep.subr.mxu1 %v2762_v22 }
 0x49a   : > { %2771 = vmatpush3.msra.mxu1 %v2762_v22 }
 0x49b   : > { %2772 = vmatprep.subr.mxu1 %v1151_v23 }
 0x49c   : > { %2773 = vmatpush3.msra.mxu1 %v1151_v23 }
 0x49d   : > { %2774 = vmatprep.subr.mxu1 %v2759_v18 }
 0x49e   : > { %2775 = vmatpush3.msra.mxu1 %v2759_v18 }
 0x49f   : > { %2776 = vmatprep.subr.mxu1 %v1141_v21 }
 0x4a0   : > { %2777 = vmatpush3.msra.mxu1 %v1141_v21 }
 0x4a1   : > { %2778 = vmatprep.subr.mxu1 %v2756_v15 }
 0x4a2   : > { %2779 = vmatpush3.msra.mxu1 %v2756_v15 }
 0x4a3   : > { %2780 = vmatprep.subr.mxu1 %v1131_v16 }
 0x4a4   : > { %2781 = vmatpush3.msra.mxu1 %v1131_v16 }
 0x4a5   : > { %2782 = vmatprep.subr.mxu1 %v2753_v13 }
 0x4a6   : > { %2783 = vmatpush3.msra.mxu1 %v2753_v13 }
 0x4a7   : > { %2784 = vmatprep.subr.mxu1 %v1121_v14 }
 0x4a8   : > { %2785 = vmatpush3.msra.mxu1 %v1121_v14 }
 0x4a9   : > { %2786 = vmatprep.subr.mxu1 %v2750_v60 }
 0x4aa   : > { %2787 = vmatpush3.msra.mxu1 %v2750_v60 }
 0x4ab   : > { %2788 = vmatprep.subr.mxu1 %v1111_v12 }
 0x4ac   : > { %2789 = vmatpush3.msra.mxu1 %v1111_v12 }
 0x4ad   : > { %2790 = vmatprep.subr.mxu1 %v2747_v58 }
 0x4ae   : > { %2791 = vmatpush3.msra.mxu1 %v2747_v58 }
 0x4af   : > { %2792 = vmatprep.subr.mxu1 %v1101_v59 }
 0x4b0   : > { %2793 = vmatpush3.msra.mxu1 %v1101_v59 }
 0x4b1   : > { %2794 = vmatprep.subr.mxu1 %v2744_v56 }
 0x4b2   : > { %2795 = vmatpush3.msra.mxu1 %v2744_v56 }
 0x4b3   : > { %2796 = vmatprep.subr.mxu1 %v1091_v57 }
 0x4b4   : > { %2797 = vmatpush3.msra.mxu1 %v1091_v57 }
 0x4b5   : > { %2799 = vmatmul.mubr.f32.vlgmr.msra.gmra.mxu1 %v3224_v61  ;;  %v3047_v61 = vld [vmem:[%s3181_s4] sm:$0xff] }
 0x4b6   : > { %2801 = vmatprep.mubr.f32.mxu1 %v3227_v62  ;;  %v279_v62 = vld [vmem:[%s3718_s2 + $0x198] sm:$0xff] }
 0x4b7   : > { %2846 = vmatprep.subr.mxu0 %v279_v62 }
 0x4b8   : > { %2847 = vmatpush3.msra.mxu0 %v279_v62 }
 0x4b9   : > { %2802 = vmatmul.mubr.f32.gmra.mxu1 %v3232_v63  ;;  %v278_v63 = vld [vmem:[%s3718_s2 + $0x190] sm:$0xff] }
 0x4ba   : > { %2804 = vmatprep.mubr.f32.mxu1 %v3235_v0  ;;  %2848 = vmatprep.subr.mxu0 %v278_v63  ;;  %v277_v0 = vld [vmem:[%s3718_s2 + $0x188] sm:$0xff] }
 0x4bb   : > { %2849 = vmatpush3.msra.mxu0 %v278_v63 }
 0x4bc   : > { %2850 = vmatprep.subr.mxu0 %v277_v0 }
 0x4bd   : > { %2805 = vmatmul.mubr.f32.gmra.mxu1 %v3240_v1  ;;  %2851 = vmatpush3.msra.mxu0 %v277_v0  ;;  %v276_v1 = vld [vmem:[%s3718_s2 + $0x180] sm:$0xff] }
 0x4be   : > { %2807 = vmatprep.mubr.f32.mxu1 %v3243_v2  ;;  %2852 = vmatprep.subr.mxu0 %v276_v1  ;;  %v1172_v2 = vsub.s32 2, %v3296_v17 }
 0x4bf   : > { %2853 = vmatpush3.msra.mxu0 %v276_v1 }
 0x4c1   : > { %2808 = vmatmul.mubr.f32.gmra.mxu1 %v3248_v3  ;;  %v3473_v3 = vrot.slane %v3302_v19, %v1172_v2 }
 0x4c2   : > { %2810 = vmatprep.mubr.f32.mxu1 %v3251_v4 }
 0x4c5   : > { %2811 = vmatmul.mubr.f32.gmra.mxu1 %v3256_v5 }
 0x4c6   : > { %2813 = vmatprep.mubr.f32.mxu1 %v3259_v6 }
 0x4c9   : > { %2814 = vmatmul.mubr.f32.gmra.mxu1 %v3264_v7 }
 0x4ca   : > { %2816 = vmatprep.mubr.f32.mxu1 %v3267_v8 }
 0x4cd   : > { %2817 = vmatmul.mubr.f32.gmra.mxu1 %v3272_v9 }
 0x4ce   : > { %2819 = vmatprep.mubr.f32.mxu1 %v3275_v10 }
 0x4d1   : > { %2820 = vmatmul.mubr.f32.gmra.mxu1 %v3280_v11 }
 0x4d2   : > { %2910 = vmatprep.mubr.f32.mxu1 %v3047_v61 }
 0x575   : > { %v2800_v4 = vpop.f32.mrf.mxu1 }
 0x576   : > { %v1246_v5 = vadd.f32 %v2800_v4, %v3473_v3 }
 0x577   : > { %v1240_v6 = vpop.f32.mrf.mxu1 }
 0x578   : > { %v1241_v7 = vadd.f32 %v1240_v6, %v3473_v3  ;;  %v1336_v8 = vmul.f32 0.01, %v1246_v5  ;;  %vm1320_vm0 = vcmp.gt.f32.partialorder %v1246_v5, 0.0 }
 0x579   : > { %v2803_v9 = vpop.f32.mrf.mxu1 }
 0x57a   : > { %v1335_v10 = vmul.f32 0.01, %v1241_v7  ;;  %v1256_v11 = vadd.f32 %v2803_v9, %v3473_v3  ;;  %vm1319_vm1 = vcmp.gt.f32.partialorder %v1241_v7, 0.0  ;;  %v1352_v29 = vsel %vm1320_vm0, %v1246_v5, %v1336_v8 }
 0x57b   : > { %v1250_v25 = vpop.f32.mrf.mxu1 }
 0x57c   : > { %v1251_v27 = vadd.f32 %v1250_v25, %v3473_v3  ;;  %v1351_v28 = vsel %vm1319_vm1, %v1241_v7, %v1335_v10  ;;  %v1338_v19 = vmul.f32 0.01, %v1256_v11  ;;  %vm1322_vm3 = vcmp.gt.f32.partialorder %v1256_v11, 0.0 }
 0x57d   : > { %v2806_v30 = vpop.f32.mrf.mxu1  ;;  %2854 = vmatprep.mubr.f32.mxu0 %v1351_v28 }
 0x57e   : > { %v1337_v31 = vmul.f32 0.01, %v1251_v27  ;;  %v1266_v33 = vadd.f32 %v2806_v30, %v3473_v3  ;;  %2855 = vmatmul.mubr.f32.vlgmr.msra.gmra.mxu0 %v1352_v29  ;;  %vm1321_vm2 = vcmp.gt.f32.partialorder %v1251_v27, 0.0  ;;  %v1354_v39 = vsel %vm1322_vm3, %v1256_v11, %v1338_v19 }
 0x57f   : > { %v1260_v34 = vpop.f32.mrf.mxu1 }
 0x580   : > { %v1261_v35 = vadd.f32 %v1260_v34, %v3473_v3  ;;  %v1353_v36 = vsel %vm1321_vm2, %v1251_v27, %v1337_v31  ;;  %v1340_v37 = vmul.f32 0.01, %v1266_v33  ;;  %vm1324_vm5 = vcmp.gt.f32.partialorder %v1266_v33, 0.0 }
 0x581   : > { %v2809_v38 = vpop.f32.mrf.mxu1  ;;  %2857 = vmatprep.mubr.f32.mxu0 %v1353_v36  ;;  %v3049_v36 = vld [vmem:[%s3181_s4 + $0x10] sm:$0xff] }
 0x582   : > { %v1339_v40 = vmul.f32 0.01, %v1261_v35  ;;  %v1276_v41 = vadd.f32 %v2809_v38, %v3473_v3  ;;  %2858 = vmatmul.mubr.f32.gmra.mxu0 %v1354_v39  ;;  %vm1323_vm4 = vcmp.gt.f32.partialorder %v1261_v35, 0.0  ;;  %v1356_v26 = vsel %vm1324_vm5, %v1266_v33, %v1340_v37  ;;  %v3050_v37 = vld [vmem:[%s3181_s4 + $0x18] sm:$0xff]  ;;  %v3051_v38 = vld [vmem:[%s3181_s4 + $0x20] sm:$0xff]  ;;  %v3052_v39 = vld [vmem:[%s3181_s4 + $0x28] sm:$0xff] }
 0x583   : > { %v1270_v20 = vpop.f32.mrf.mxu1 }
 0x584   : > { %v1271_v42 = vadd.f32 %v1270_v20, %v3473_v3  ;;  %v1355_v43 = vsel %vm1323_vm4, %v1261_v35, %v1339_v40  ;;  %v1342_v44 = vmul.f32 0.01, %v1276_v41  ;;  %vm1326_vm7 = vcmp.gt.f32.partialorder %v1276_v41, 0.0  ;;  %v3048_v35 = vld [vmem:[%s3181_s4 + $0x8] sm:$0xff]  ;;  %v3053_v40 = vld [vmem:[%s3181_s4 + $0x30] sm:$0xff]  ;;  %v3055_v20 = vld [vmem:[%s3181_s4 + $0x40] sm:$0xff] }
 0x585   : > { %v2812_v45 = vpop.f32.mrf.mxu1  ;;  %2860 = vmatprep.mubr.f32.mxu0 %v1355_v43  ;;  %v3057_v43 = vld [vmem:[%s3181_s4 + $0x50] sm:$0xff] }
 0x586   : > { %v1341_v46 = vmul.f32 0.01, %v1271_v42  ;;  %v1286_v47 = vadd.f32 %v2812_v45, %v3473_v3  ;;  %2861 = vmatmul.mubr.f32.gmra.mxu0 %v1356_v26  ;;  %vm1325_vm6 = vcmp.gt.f32.partialorder %v1271_v42, 0.0  ;;  %v1358_v53 = vsel %vm1326_vm7, %v1276_v41, %v1342_v44  ;;  %v3054_v41 = vld [vmem:[%s3181_s4 + $0x38] sm:$0xff]  ;;  %v3059_v45 = vld [vmem:[%s3181_s4 + $0x60] sm:$0xff]  ;;  %v3060_v26 = vld [vmem:[%s3181_s4 + $0x68] sm:$0xff] }
 0x587   : > { %v1280_v48 = vpop.f32.mrf.mxu1  ;;  %v3058_v44 = vld [vmem:[%s3181_s4 + $0x58] sm:$0xff] }
 0x588   : > { %v1281_v49 = vadd.f32 %v1280_v48, %v3473_v3  ;;  %v1357_v50 = vsel %vm1325_vm6, %v1271_v42, %v1341_v46  ;;  %v1344_v51 = vmul.f32 0.01, %v1286_v47  ;;  %vm1328_vm9 = vcmp.gt.f32.partialorder %v1286_v47, 0.0  ;;  %v3056_v42 = vld [vmem:[%s3181_s4 + $0x48] sm:$0xff]  ;;  %v3061_v46 = vld [vmem:[%s3181_s4 + $0x70] sm:$0xff]  ;;  %v307_v48 = vld [vmem:[%s3718_s2 + $0x278] sm:$0xff] }
 0x589   : > { %v2815_v52 = vpop.f32.mrf.mxu1  ;;  %2863 = vmatprep.mubr.f32.mxu0 %v1357_v50  ;;  %2934 = vmatprep.subr.mxu0 %v307_v48  ;;  %v305_v50 = vld [vmem:[%s3718_s2 + $0x268] sm:$0xff] }
 0x58a   : > { %v1343_v54 = vmul.f32 0.01, %v1281_v49  ;;  %v1296_v55 = vadd.f32 %v2815_v52, %v3473_v3  ;;  %2864 = vmatmul.mubr.f32.gmra.mxu0 %v1358_v53  ;;  %vm1327_vm8 = vcmp.gt.f32.partialorder %v1281_v49, 0.0  ;;  %v1360_v12 = vsel %vm1328_vm9, %v1286_v47, %v1344_v51  ;;  %v3062_v47 = vld [vmem:[%s3181_s4 + $0x78] sm:$0xff]  ;;  %v304_v51 = vld [vmem:[%s3718_s2 + $0x260] sm:$0xff]  ;;  %v302_v53 = vld [vmem:[%s3718_s2 + $0x250] sm:$0xff] }
 0x58b   : > { %v1290_v56 = vpop.f32.mrf.mxu1  ;;  %2935 = vmatpush3.msra.mxu0 %v307_v48  ;;  %v303_v52 = vld [vmem:[%s3718_s2 + $0x258] sm:$0xff] }
 0x58c   : > { %v1291_v57 = vadd.f32 %v1290_v56, %v3473_v3  ;;  %v1359_v58 = vsel %vm1327_vm8, %v1281_v49, %v1343_v54  ;;  %v1346_v59 = vmul.f32 0.01, %v1296_v55  ;;  %vm1330_vm11 = vcmp.gt.f32.partialorder %v1296_v55, 0.0  ;;  %v306_v49 = vld [vmem:[%s3718_s2 + $0x270] sm:$0xff]  ;;  %v301_v54 = vld [vmem:[%s3718_s2 + $0x248] sm:$0xff]  ;;  %v299_v56 = vld [vmem:[%s3718_s2 + $0x238] sm:$0xff] }
 0x58d   : > { %v2818_v60 = vpop.f32.mrf.mxu1  ;;  %2866 = vmatprep.mubr.f32.mxu0 %v1359_v58  ;;  %2936 = vmatprep.subr.mxu0 %v306_v49  ;;  %v297_v58 = vld [vmem:[%s3718_s2 + $0x228] sm:$0xff]  ;;  %vm1825_vm8 = vcmask 1041409  }
 0x58e   : > { %v1345_v13 = vmul.f32 0.01, %v1291_v57  ;;  %v1306_v14 = vadd.f32 %v2818_v60, %v3473_v3  ;;  %2867 = vmatmul.mubr.f32.gmra.mxu0 %v1360_v12  ;;  %vm1329_vm10 = vcmp.gt.f32.partialorder %v1291_v57, 0.0  ;;  %v1362_v23 = vsel %vm1330_vm11, %v1296_v55, %v1346_v59  ;;  %v300_v55 = vld [vmem:[%s3718_s2 + $0x240] sm:$0xff]  ;;  %v295_v60 = vld [vmem:[%s3718_s2 + $0x218] sm:$0xff] }
 0x58f   : > { %v1300_v15 = vpop.f32.mrf.mxu1  ;;  %2937 = vmatpush3.msra.mxu0 %v306_v49  ;;  %v296_v59 = vld [vmem:[%s3718_s2 + $0x220] sm:$0xff]  ;;  %v323_v12 = vld [vmem:[%s3718_s2 + $0x2f8] sm:$0xff] }
 0x590   : > { %v1301_v16 = vadd.f32 %v1300_v15, %v3473_v3  ;;  %v1361_v18 = vsel %vm1329_vm10, %v1291_v57, %v1345_v13  ;;  %v1348_v21 = vmul.f32 0.01, %v1306_v14  ;;  %vm1332_vm13 = vcmp.gt.f32.partialorder %v1306_v14, 0.0  ;;  %2938 = vmatprep.subr.mxu0 %v305_v50  ;;  %v298_v57 = vld [vmem:[%s3718_s2 + $0x230] sm:$0xff]  ;;  %v321_v15 = vld [vmem:[%s3718_s2 + $0x2e8] sm:$0xff] }
 0x591   : > { %v2821_v22 = vpop.f32.mrf.mxu1  ;;  %2869 = vmatprep.mubr.f32.mxu0 %v1361_v18  ;;  %2939 = vmatpush3.msra.mxu0 %v305_v50  ;;  %v322_v13 = vld [vmem:[%s3718_s2 + $0x2f0] sm:$0xff]  ;;  %v320_v18 = vld [vmem:[%s3718_s2 + $0x2e0] sm:$0xff] }
 0x592   : > { %v1347_v24 = vmul.f32 0.01, %v1301_v16  ;;  %v1316_v32 = vadd.f32 %v2821_v22, %v3473_v3  ;;  %2870 = vmatmul.mubr.f32.gmra.mxu0 %v1362_v23  ;;  %vm1331_vm12 = vcmp.gt.f32.partialorder %v1301_v16, 0.0  ;;  %v1364_v1 = vsel %vm1332_vm13, %v1306_v14, %v1348_v21  ;;  %2940 = vmatprep.subr.mxu0 %v304_v51  ;;  %v294_v14 = vld [vmem:[%s3718_s2 + $0x210] sm:$0xff]  ;;  %v292_v21 = vld [vmem:[%s3718_s2 + $0x200] sm:$0xff]  ;;  %v319_v22 = vld [vmem:[%s3718_s2 + $0x2d8] sm:$0xff] }
 0x593   : > { %v1310_v61 = vpop.f32.mrf.mxu1  ;;  %2941 = vmatpush3.msra.mxu0 %v304_v51  ;;  %v318_v23 = vld [vmem:[%s3718_s2 + $0x2d0] sm:$0xff]  ;;  %vm1827_vm13 = vcmask 1042434  }
 0x594   : > { %v1311_v62 = vadd.f32 %v1310_v61, %v3473_v3  ;;  %v1363_v63 = vsel %vm1331_vm12, %v1301_v16, %v1347_v24  ;;  %v1350_v0 = vmul.f32 0.01, %v1316_v32  ;;  %vm1334_vm15 = vcmp.gt.f32.partialorder %v1316_v32, 0.0  ;;  %2942 = vmatprep.subr.mxu0 %v303_v52  ;;  %v293_v16 = vld [vmem:[%s3718_s2 + $0x208] sm:$0xff]  ;;  %v315_v61 = vld [vmem:[%s3718_s2 + $0x2b8] sm:$0xff] }
 0x595   : > { %2872 = vmatprep.mubr.f32.mxu0 %v1363_v63  ;;  %2943 = vmatpush3.msra.mxu0 %v303_v52  ;;  %v317_v24 = vld [vmem:[%s3718_s2 + $0x2c8] sm:$0xff] }
 0x596   : > { %v1349_v2 = vmul.f32 0.01, %v1311_v62  ;;  %2873 = vmatmul.mubr.f32.gmra.mxu0 %v1364_v1  ;;  %vm1333_vm14 = vcmp.gt.f32.partialorder %v1311_v62, 0.0  ;;  %v1366_v5 = vsel %vm1334_vm15, %v1316_v32, %v1350_v0  ;;  %2944 = vmatprep.subr.mxu0 %v302_v53  ;;  %v316_v32 = vld [vmem:[%s3718_s2 + $0x2c0] sm:$0xff]  ;;  %v313_v63 = vld [vmem:[%s3718_s2 + $0x2a8] sm:$0xff]  ;;  %v1514_v1 = vsub.s32 3, %v3296_v17 }
 0x597   : > { %2945 = vmatpush3.msra.mxu0 %v302_v53  ;;  %v312_v0 = vld [vmem:[%s3718_s2 + $0x2a0] sm:$0xff] }
 0x598   : > { %v1365_v4 = vsel %vm1333_vm14, %v1311_v62, %v1349_v2  ;;  %2946 = vmatprep.subr.mxu0 %v301_v54  ;;  %v314_v62 = vld [vmem:[%s3718_s2 + $0x2b0] sm:$0xff]  ;;  %v3594_v2 = vld [vmem:[%s3718_s2 + $0x380] sm:$0xff] }
 0x599   : > { %2875 = vmatprep.mubr.f32.mxu0 %v1365_v4  ;;  %2947 = vmatpush3.msra.mxu0 %v301_v54  ;;  %v3597_v4 = vrot.slane %v3594_v2, %v1514_v1 }
 0x59a   : > { %2876 = vmatmul.mubr.f32.gmra.mxu0 %v1366_v5  ;;  %2948 = vmatprep.subr.mxu0 %v300_v55 }
 0x59b   : > { %2949 = vmatpush3.msra.mxu0 %v300_v55 }
 0x59c   : > { %2950 = vmatprep.subr.mxu0 %v299_v56 }
 0x59d   : > { %2951 = vmatpush3.msra.mxu0 %v299_v56 }
 0x59e   : > { %2952 = vmatprep.subr.mxu0 %v298_v57 }
 0x59f   : > { %2953 = vmatpush3.msra.mxu0 %v298_v57 }
 0x5a0   : > { %2954 = vmatprep.subr.mxu0 %v297_v58 }
 0x5a1   : > { %2955 = vmatpush3.msra.mxu0 %v297_v58 }
 0x5a2   : > { %2956 = vmatprep.subr.mxu0 %v296_v59 }
 0x5a3   : > { %2957 = vmatpush3.msra.mxu0 %v296_v59 }
 0x5a4   : > { %2958 = vmatprep.subr.mxu0 %v295_v60 }
 0x5a5   : > { %2959 = vmatpush3.msra.mxu0 %v295_v60 }
 0x5a6   : > { %2960 = vmatprep.subr.mxu0 %v294_v14 }
 0x5a7   : > { %2961 = vmatpush3.msra.mxu0 %v294_v14 }
 0x5a8   : > { %2962 = vmatprep.subr.mxu0 %v293_v16 }
 0x5a9   : > { %2963 = vmatpush3.msra.mxu0 %v293_v16 }
 0x5aa   : > { %2964 = vmatprep.subr.mxu0 %v292_v21 }
 0x5ab   : > { %2965 = vmatpush3.msra.mxu0 %v292_v21 }
 0x63e   : > { %v2856_v6 = vpop.f32.mrf.mxu0 }
 0x640   : > { %v1433_v7 = vpop.f32.mrf.mxu0 }
 0x642   : > { %v2859_v8 = vpop.f32.mrf.mxu0 }
 0x644   : > { %v1443_v9 = vpop.f32.mrf.mxu0 }
 0x646   : > { %v2862_v10 = vpop.f32.mrf.mxu0 }
 0x648   : > { %v1453_v11 = vpop.f32.mrf.mxu0 }
 0x64a   : > { %v2865_v25 = vpop.f32.mrf.mxu0 }
 0x64c   : > { %v1463_v3 = vpop.f32.mrf.mxu0 }
 0x64e   : > { %v2868_v27 = vpop.f32.mrf.mxu0 }
 0x650   : > { %v1473_v28 = vpop.f32.mrf.mxu0 }
 0x652   : > { %v2871_v29 = vpop.f32.mrf.mxu0 }
 0x654   : > { %v1483_v19 = vpop.f32.mrf.mxu0 }
 0x656   : > { %v2874_v30 = vpop.f32.mrf.mxu0 }
 0x658   : > { %v1493_v31 = vpop.f32.mrf.mxu0 }
 0x65a   : > { %v2877_v33 = vpop.f32.mrf.mxu0 }
 0x65b   : > { %2878 = vmatprep.subr.mxu1 %v2877_v33 }
 0x65c   : > { %v1503_v34 = vpop.f32.mrf.mxu0  ;;  %2879 = vmatpush3.msra.mxu1 %v2877_v33 }
 0x65d   : > { %2880 = vmatprep.subr.mxu1 %v1503_v34 }
 0x65e   : > { %2881 = vmatpush3.msra.mxu1 %v1503_v34 }
 0x65f   : > { %2882 = vmatprep.subr.mxu1 %v2874_v30 }
 0x660   : > { %2883 = vmatpush3.msra.mxu1 %v2874_v30 }
 0x661   : > { %2884 = vmatprep.subr.mxu1 %v1493_v31 }
 0x662   : > { %2885 = vmatpush3.msra.mxu1 %v1493_v31 }
 0x663   : > { %2886 = vmatprep.subr.mxu1 %v2871_v29 }
 0x664   : > { %2887 = vmatpush3.msra.mxu1 %v2871_v29 }
 0x665   : > { %2888 = vmatprep.subr.mxu1 %v1483_v19 }
 0x666   : > { %2889 = vmatpush3.msra.mxu1 %v1483_v19 }
 0x667   : > { %2890 = vmatprep.subr.mxu1 %v2868_v27 }
 0x668   : > { %2891 = vmatpush3.msra.mxu1 %v2868_v27 }
 0x669   : > { %2892 = vmatprep.subr.mxu1 %v1473_v28 }
 0x66a   : > { %2893 = vmatpush3.msra.mxu1 %v1473_v28 }
 0x66b   : > { %2894 = vmatprep.subr.mxu1 %v2865_v25 }
 0x66c   : > { %2895 = vmatpush3.msra.mxu1 %v2865_v25 }
 0x66d   : > { %2896 = vmatprep.subr.mxu1 %v1463_v3 }
 0x66e   : > { %2897 = vmatpush3.msra.mxu1 %v1463_v3 }
 0x66f   : > { %2898 = vmatprep.subr.mxu1 %v2862_v10 }
 0x670   : > { %2899 = vmatpush3.msra.mxu1 %v2862_v10 }
 0x671   : > { %2900 = vmatprep.subr.mxu1 %v1453_v11 }
 0x672   : > { %2901 = vmatpush3.msra.mxu1 %v1453_v11 }
 0x673   : > { %2902 = vmatprep.subr.mxu1 %v2859_v8 }
 0x674   : > { %2903 = vmatpush3.msra.mxu1 %v2859_v8 }
 0x675   : > { %2904 = vmatprep.subr.mxu1 %v1443_v9 }
 0x676   : > { %2905 = vmatpush3.msra.mxu1 %v1443_v9 }
 0x677   : > { %2906 = vmatprep.subr.mxu1 %v2856_v6 }
 0x678   : > { %2907 = vmatpush3.msra.mxu1 %v2856_v6 }
 0x679   : > { %2908 = vmatprep.subr.mxu1 %v1433_v7 }
 0x67a   : > { %2909 = vmatpush3.msra.mxu1 %v1433_v7 }
 0x67b   : > { %2911 = vmatmul.mubr.f32.vlgmr.msra.gmra.mxu1 %v3048_v35  ;;  %2969 = vmatprep.subr.mxu1 %v323_v12 }
 0x67c   : > { %2913 = vmatprep.mubr.f32.mxu1 %v3049_v36  ;;  %2970 = vmatpush3.msra.mxu1 %v323_v12 }
 0x67d   : > { %2971 = vmatprep.subr.mxu1 %v322_v13 }
 0x67e   : > { %2972 = vmatpush3.msra.mxu1 %v322_v13 }
 0x67f   : > { %2914 = vmatmul.mubr.f32.gmra.mxu1 %v3050_v37  ;;  %2973 = vmatprep.subr.mxu1 %v321_v15 }
 0x680   : > { %2916 = vmatprep.mubr.f32.mxu1 %v3051_v38  ;;  %2974 = vmatpush3.msra.mxu1 %v321_v15 }
 0x681   : > { %2975 = vmatprep.subr.mxu1 %v320_v18 }
 0x682   : > { %2976 = vmatpush3.msra.mxu1 %v320_v18 }
 0x683   : > { %2917 = vmatmul.mubr.f32.gmra.mxu1 %v3052_v39  ;;  %2977 = vmatprep.subr.mxu1 %v319_v22 }
 0x684   : > { %2919 = vmatprep.mubr.f32.mxu1 %v3053_v40  ;;  %2978 = vmatpush3.msra.mxu1 %v319_v22 }
 0x685   : > { %2979 = vmatprep.subr.mxu1 %v318_v23 }
 0x686   : > { %2980 = vmatpush3.msra.mxu1 %v318_v23 }
 0x687   : > { %2920 = vmatmul.mubr.f32.gmra.mxu1 %v3054_v41  ;;  %2981 = vmatprep.subr.mxu1 %v317_v24 }
 0x688   : > { %2922 = vmatprep.mubr.f32.mxu1 %v3055_v20  ;;  %2982 = vmatpush3.msra.mxu1 %v317_v24 }
 0x689   : > { %2983 = vmatprep.subr.mxu1 %v316_v32 }
 0x68a   : > { %2984 = vmatpush3.msra.mxu1 %v316_v32 }
 0x68b   : > { %2923 = vmatmul.mubr.f32.gmra.mxu1 %v3056_v42  ;;  %2985 = vmatprep.subr.mxu1 %v315_v61 }
 0x68c   : > { %2925 = vmatprep.mubr.f32.mxu1 %v3057_v43  ;;  %2986 = vmatpush3.msra.mxu1 %v315_v61 }
 0x68d   : > { %2987 = vmatprep.subr.mxu1 %v314_v62 }
 0x68e   : > { %2988 = vmatpush3.msra.mxu1 %v314_v62 }
 0x68f   : > { %2926 = vmatmul.mubr.f32.gmra.mxu1 %v3058_v44  ;;  %2989 = vmatprep.subr.mxu1 %v313_v63 }
 0x690   : > { %2928 = vmatprep.mubr.f32.mxu1 %v3059_v45  ;;  %2990 = vmatpush3.msra.mxu1 %v313_v63 }
 0x691   : > { %2991 = vmatprep.subr.mxu1 %v312_v0 }
 0x692   : > { %2992 = vmatpush3.msra.mxu1 %v312_v0 }
 0x693   : > { %2929 = vmatmul.mubr.f32.gmra.mxu1 %v3060_v26 }
 0x694   : > { %2931 = vmatprep.mubr.f32.mxu1 %v3061_v46 }
 0x697   : > { %2932 = vmatmul.mubr.f32.gmra.mxu1 %v3062_v47 }
 0x73b   : > { %v2912_v5 = vpop.f32.mrf.mxu1 }
 0x73c   : > { %v1588_v6 = vadd.f32 %v2912_v5, %v3597_v4 }
 0x73d   : > { %v1582_v7 = vpop.f32.mrf.mxu1 }
 0x73e   : > { %vm1662_vm0 = vcmp.gt.f32.partialorder %v1588_v6, 0.0  ;;  %v1678_v8 = vmul.f32 0.01, %v1588_v6  ;;  %v1583_v9 = vadd.f32 %v1582_v7, %v3597_v4 }
 0x73f   : > { %v2915_v10 = vpop.f32.mrf.mxu1 }
 0x740   : > { %v1694_v11 = vsel %vm1662_vm0, %v1588_v6, %v1678_v8  ;;  %vm1661_vm1 = vcmp.gt.f32.partialorder %v1583_v9, 0.0  ;;  %v1677_v25 = vmul.f32 0.01, %v1583_v9  ;;  %v1598_v3 = vadd.f32 %v2915_v10, %v3597_v4 }
 0x741   : > { %v1715_v27 = vrot.slane %v1694_v11, 4  ;;  %v1592_v28 = vpop.f32.mrf.mxu1  ;;  %vm1829_vm0 = vcmask 1043459  }
 0x742   : > { %v1693_v29 = vsel %vm1661_vm1, %v1583_v9, %v1677_v25  ;;  %vm1664_vm2 = vcmp.gt.f32.partialorder %v1598_v3, 0.0  ;;  %v1680_v19 = vmul.f32 0.01, %v1598_v3  ;;  %v1593_v30 = vadd.f32 %v1592_v28, %v3597_v4 }
 0x743   : > { %v1716_v31 = vadd.f32 %v1715_v27, %v1694_v11  ;;  %v1709_v33 = vrot.slane %v1693_v29, 4  ;;  %v2918_v34 = vpop.f32.mrf.mxu1  ;;  %vm1831_vm1 = vcmask 1044484  }
 0x744   : > { %v1696_v35 = vsel %vm1664_vm2, %v1598_v3, %v1680_v19  ;;  %vm1663_vm3 = vcmp.gt.f32.partialorder %v1593_v30, 0.0  ;;  %v1679_v36 = vmul.f32 0.01, %v1593_v30  ;;  %v1608_v37 = vadd.f32 %v2918_v34, %v3597_v4 }
 0x745   : > { %v1717_v38 = vrot.slane %v1716_v31, 2  ;;  %v1710_v39 = vadd.f32 %v1709_v33, %v1693_v29  ;;  %v1727_v40 = vrot.slane %v1696_v35, 4  ;;  %v1602_v41 = vpop.f32.mrf.mxu1 }
 0x746   : > { %v1695_v20 = vsel %vm1663_vm3, %v1593_v30, %v1679_v36  ;;  %vm1666_vm4 = vcmp.gt.f32.partialorder %v1608_v37, 0.0  ;;  %v1682_v42 = vmul.f32 0.01, %v1608_v37  ;;  %v1603_v43 = vadd.f32 %v1602_v41, %v3597_v4 }
 0x747   : > { %v1718_v44 = vadd.f32 %v1717_v38, %v1716_v31  ;;  %v1711_v45 = vrot.slane %v1710_v39, 2  ;;  %v1728_v26 = vadd.f32 %v1727_v40, %v1696_v35  ;;  %v1721_v46 = vrot.slane %v1695_v20, 4  ;;  %v2921_v47 = vpop.f32.mrf.mxu1 }
 0x748   : > { %v1698_v48 = vsel %vm1666_vm4, %v1608_v37, %v1682_v42  ;;  %vm1665_vm5 = vcmp.gt.f32.partialorder %v1603_v43, 0.0  ;;  %v1681_v49 = vmul.f32 0.01, %v1603_v43  ;;  %v1618_v50 = vadd.f32 %v2921_v47, %v3597_v4 }
 0x749   : > { %v1712_v51 = vadd.f32 %v1711_v45, %v1710_v39  ;;  %v1729_v52 = vrot.slane %v1728_v26, 2  ;;  %v1722_v53 = vadd.f32 %v1721_v46, %v1695_v20  ;;  %v1612_v54 = vpop.f32.mrf.mxu1  ;;  %v1739_v55 = vrot.slane %v1698_v48, 4 }
 0x74a   : > { %v1697_v56 = vsel %vm1665_vm5, %v1603_v43, %v1681_v49  ;;  %vm1668_vm6 = vcmp.gt.f32.partialorder %v1618_v50, 0.0  ;;  %v1684_v57 = vmul.f32 0.01, %v1618_v50  ;;  %v1719_v58 = vrot.slane %v1718_v44, 1 }
 0x74b   : > { %v1713_v59 = vrot.slane %v1712_v51, 1  ;;  %v1730_v60 = vadd.f32 %v1729_v52, %v1728_v26  ;;  %v1723_v12 = vrot.slane %v1722_v53, 2  ;;  %v2924_v13 = vpop.f32.mrf.mxu1  ;;  %v1740_v14 = vadd.f32 %v1739_v55, %v1698_v48 }
 0x74c   : > { %v1733_v15 = vrot.slane %v1697_v56, 4  ;;  %v1700_v16 = vsel %vm1668_vm6, %v1618_v50, %v1684_v57  ;;  %v1613_v18 = vadd.f32 %v1612_v54, %v3597_v4  ;;  %v1720_v32 = vadd.f32 %v1719_v58, %v1718_v44 }
 0x74d   : > { %v1622_v21 = vpop.f32.mrf.mxu1  ;;  %v1714_v22 = vadd.f32 %v1713_v59, %v1712_v51  ;;  %v1724_v23 = vadd.f32 %v1723_v12, %v1722_v53  ;;  %v1731_v61 = vrot.slane %v1730_v60, 1  ;;  %v1751_v62 = vrot.slane %v1700_v16, 4 }
 0x74e   : > { %vm1667_vm7 = vcmp.gt.f32.partialorder %v1613_v18, 0.0  ;;  %v1683_v24 = vmul.f32 0.01, %v1613_v18  ;;  %v1741_v0 = vrot.slane %v1740_v14, 2  ;;  %v1734_v1 = vadd.f32 %v1733_v15, %v1697_v56 }
 0x74f   : > { %v2927_v63 = vpop.f32.mrf.mxu1  ;;  %v1628_v6 = vadd.f32 %v2924_v13, %v3597_v4  ;;  %v1623_v8 = vadd.f32 %v1622_v21, %v3597_v4  ;;  %v3610_v10 = vsel %vm1825_vm8, %v1720_v32, %v1714_v22  ;;  %v1725_v11 = vrot.slane %v1724_v23, 1 }
 0x750   : > { %v1699_v5 = vsel %vm1667_vm7, %v1613_v18, %v1683_v24  ;;  %v3612_v3 = vadd.f32 %v1731_v61, %v1730_v60  ;;  %v3614_v27 = vadd.f32 %v1751_v62, %v1700_v16  ;;  %v1742_v19 = vadd.f32 %v1741_v0, %v1740_v14 }
 0x751   : > { %v1745_v7 = vrot.slane %v1699_v5, 4  ;;  %v1632_v9 = vpop.f32.mrf.mxu1  ;;  %vm1670_vm9 = vcmp.gt.f32.partialorder %v1628_v6, 0.0  ;;  %v1686_v25 = vmul.f32 0.01, %v1628_v6  ;;  %vm1669_vm10 = vcmp.gt.f32.partialorder %v1623_v8, 0.0 }
 0x752   : > { %v1685_v28 = vmul.f32 0.01, %v1623_v8  ;;  %v1735_v30 = vrot.slane %v1734_v1, 2  ;;  %v1638_v33 = vadd.f32 %v2927_v63, %v3597_v4  ;;  %v1633_v37 = vadd.f32 %v1632_v9, %v3597_v4 }
 0x753   : > { %v2930_v29 = vpop.f32.mrf.mxu1  ;;  %v1702_v31 = vsel %vm1670_vm9, %v1628_v6, %v1686_v25  ;;  %v1746_v34 = vadd.f32 %v1745_v7, %v1699_v5  ;;  %v3618_v39 = vadd.f32 %v1725_v11, %v1724_v23  ;;  %v1753_v20 = vrot.slane %v3614_v27, 2 }
 0x754   : > { %v1763_v35 = vrot.slane %v1702_v31, 4  ;;  %v1701_v36 = vsel %vm1669_vm10, %v1623_v8, %v1685_v28  ;;  %vm1672_vm11 = vcmp.gt.f32.partialorder %v1638_v33, 0.0  ;;  %v1688_v41 = vmul.f32 0.01, %v1638_v33 }
 0x755   : > { %v1642_v38 = vpop.f32.mrf.mxu1  ;;  %v1757_v40 = vrot.slane %v1701_v36, 4  ;;  %vm1671_vm12 = vcmp.gt.f32.partialorder %v1633_v37, 0.0  ;;  %v1687_v43 = vmul.f32 0.01, %v1633_v37  ;;  %v1648_v26 = vadd.f32 %v2930_v29, %v3597_v4 }
 0x756   : > { %v1764_v42 = vadd.f32 %v1763_v35, %v1702_v31  ;;  %v1704_v45 = vsel %vm1672_vm11, %v1638_v33, %v1688_v41  ;;  %v1643_v46 = vadd.f32 %v1642_v38, %v3597_v4  ;;  %v1747_v47 = vrot.slane %v1746_v34, 2 }
 0x757   : > { %v1758_v44 = vadd.f32 %v1757_v40, %v1701_v36  ;;  %v1775_v49 = vrot.slane %v1704_v45, 4  ;;  %v1703_v50 = vsel %vm1671_vm12, %v1633_v37, %v1687_v43  ;;  %v2933_v51 = vpop.f32.mrf.mxu1  ;;  %vm1674_vm14 = vcmp.gt.f32.partialorder %v1648_v26, 0.0 }
 0x758   : > { %v1765_v48 = vrot.slane %v1764_v42, 2  ;;  %v1769_v53 = vrot.slane %v1703_v50, 4  ;;  %v1690_v54 = vmul.f32 0.01, %v1648_v26  ;;  %v1736_v55 = vadd.f32 %v1735_v30, %v1734_v1 }
 0x759   : > { %v1759_v52 = vrot.slane %v1758_v44, 2  ;;  %v1776_v56 = vadd.f32 %v1775_v49, %v1704_v45  ;;  %vm1673_vm15 = vcmp.gt.f32.partialorder %v1643_v46, 0.0  ;;  %v1689_v57 = vmul.f32 0.01, %v1643_v46  ;;  %v1652_v18 = vpop.f32.mrf.mxu1 }
 0x75a   : > { %v1770_v59 = vadd.f32 %v1769_v53, %v1703_v50  ;;  %v1706_v60 = vsel %vm1674_vm14, %v1648_v26, %v1690_v54  ;;  %v1658_v12 = vadd.f32 %v2933_v51, %v3597_v4  ;;  %v1743_v13 = vrot.slane %v1742_v19, 1 }
 0x75b   : > { %v1760_v58 = vadd.f32 %v1759_v52, %v1758_v44  ;;  %v1748_v14 = vadd.f32 %v1747_v47, %v1746_v34  ;;  %v1787_v15 = vrot.slane %v1706_v60, 4  ;;  %v1705_v16 = vsel %vm1673_vm15, %v1643_v46, %v1689_v57 }
 0x75c   : > { %v1766_v21 = vadd.f32 %v1765_v48, %v1764_v42  ;;  %v1771_v22 = vrot.slane %v1770_v59, 2  ;;  %v1781_v23 = vrot.slane %v1705_v16, 4  ;;  %vm1676_vm2 = vcmp.gt.f32.partialorder %v1658_v12, 0.0 }
 0x75d   : > { %vm1833_vm3 = vcmask 1045509   ;;  %v1737_v24 = vrot.slane %v1736_v55, 1  ;;  %v1777_v32 = vrot.slane %v1776_v56, 2  ;;  %v1788_v61 = vadd.f32 %v1787_v15, %v1706_v60 }
 0x75e   : > { %v1692_v62 = vmul.f32 0.01, %v1658_v12  ;;  %vm1835_vm4 = vcmask 1046534   ;;  %v1761_v63 = vrot.slane %v1760_v58, 1  ;;  %v1772_v0 = vadd.f32 %v1771_v22, %v1770_v59  ;;  %v310_v22 = vld [vmem:[%s3718_s2 + $0x290] sm:$0xff] }
 0x75f   : > { %v1782_v1 = vadd.f32 %v1781_v23, %v1705_v16  ;;  %v1653_v5 = vadd.f32 %v1652_v18, %v3597_v4  ;;  %v1744_v6 = vadd.f32 %v1743_v13, %v1742_v19  ;;  %v1754_v7 = vadd.f32 %v1753_v20, %v3614_v27  ;;  %v309_v23 = vld [vmem:[%s3718_s2 + $0x288] sm:$0xff] }
 0x760   : > { %v1749_v8 = vrot.slane %v1748_v14, 1  ;;  %v1708_v9 = vsel %vm1676_vm2, %v1658_v12, %v1692_v62  ;;  %v1767_v11 = vrot.slane %v1766_v21, 1  ;;  %v1773_v25 = vrot.slane %v1772_v0, 1  ;;  %v337_v62 = vld [vmem:[%s3718_s2 + $0x368] sm:$0xff] }
 0x761   : > { %v1783_v28 = vrot.slane %v1782_v1, 2  ;;  %v1799_v29 = vrot.slane %v1708_v9, 4  ;;  %v1778_v30 = vadd.f32 %v1777_v32, %v1776_v56  ;;  %v1789_v31 = vrot.slane %v1788_v61, 2  ;;  %v339_v32 = vld [vmem:[%s3718_s2 + $0x378] sm:$0xff] }
 0x762   : > { %vm1675_vm5 = vcmp.gt.f32.partialorder %v1653_v5, 0.0  ;;  %v1691_v33 = vmul.f32 0.01, %v1653_v5  ;;  %v1738_v34 = vadd.f32 %v1737_v24, %v1736_v55  ;;  %v1762_v35 = vadd.f32 %v1761_v63, %v1760_v58  ;;  %v308_v24 = vld [vmem:[%s3718_s2 + $0x280] sm:$0xff]  ;;  %3004 = vmatprep.subr.mxu0 %v339_v32 }
 0x763   : > { %v1784_v36 = vadd.f32 %v1783_v28, %v1782_v1  ;;  %v1800_v37 = vadd.f32 %v1799_v29, %v1708_v9  ;;  %v1750_v40 = vadd.f32 %v1749_v8, %v1748_v14  ;;  %v1755_v4 = vrot.slane %v1754_v7, 1  ;;  %v336_v63 = vld [vmem:[%s3718_s2 + $0x360] sm:$0xff]  ;;  %v334_v1 = vld [vmem:[%s3718_s2 + $0x350] sm:$0xff]  ;;  %v329_v9 = vld [vmem:[%s3718_s2 + $0x328] sm:$0xff] }
 0x764   : > { %v1707_v38 = vsel %vm1675_vm5, %v1653_v5, %v1691_v33  ;;  %v1828_v27 = vsel %vm1827_vm13, %v3618_v39, %v3610_v10  ;;  %v1774_v19 = vadd.f32 %v1773_v25, %v1772_v0  ;;  %v1768_v43 = vadd.f32 %v1767_v11, %v1766_v21  ;;  %v311_v21 = vld [vmem:[%s3718_s2 + $0x298] sm:$0xff]  ;;  %v333_v5 = vld [vmem:[%s3718_s2 + $0x348] sm:$0xff]  ;;  %v330_v8 = vld [vmem:[%s3718_s2 + $0x330] sm:$0xff] }
 0x765   : > { %v1785_v41 = vrot.slane %v1784_v36, 1  ;;  %v1801_v20 = vrot.slane %v1800_v37, 2  ;;  %v1793_v42 = vrot.slane %v1707_v38, 4  ;;  %v1779_v44 = vrot.slane %v1778_v30, 1  ;;  %2993 = vmatprep.subr.mxu1 %v311_v21  ;;  %v335_v0 = vld [vmem:[%s3718_s2 + $0x358] sm:$0xff]  ;;  %v328_v11 = vld [vmem:[%s3718_s2 + $0x320] sm:$0xff] }
 0x766   : > { %v1790_v45 = vadd.f32 %v1789_v31, %v1788_v61  ;;  %v1830_v26 = vsel %vm1829_vm0, %v3612_v3, %v1828_v27  ;;  %vm1837_vm6 = vcmask 1047559   ;;  %v1839_v48 = vsel %vm1825_vm8, %v1768_v43, %v1762_v35  ;;  %2994 = vmatpush3.msra.mxu1 %v311_v21  ;;  %v338_v61 = vld [vmem:[%s3718_s2 + $0x370] sm:$0xff]  ;;  %v324_v27 = vld [vmem:[%s3718_s2 + $0x300] sm:$0xff] }
 0x767   : > { %v1794_v46 = vadd.f32 %v1793_v42, %v1707_v38  ;;  %v1832_v47 = vsel %vm1831_vm1, %v1738_v34, %v1830_v26  ;;  %v1802_v49 = vadd.f32 %v1801_v20, %v1800_v37  ;;  %v1756_v50 = vadd.f32 %v1755_v4, %v1754_v7  ;;  %2995 = vmatprep.subr.mxu1 %v310_v22  ;;  %v331_v7 = vld [vmem:[%s3718_s2 + $0x338] sm:$0xff]  ;;  %v325_v4 = vld [vmem:[%s3718_s2 + $0x308] sm:$0xff] }
 0x768   : > { %v1834_v10 = vsel %vm1833_vm3, %v1744_v6, %v1832_v47  ;;  %v1840_v39 = vsel %vm1827_vm13, %v1774_v19, %v1839_v48  ;;  %v1786_v51 = vadd.f32 %v1785_v41, %v1784_v36  ;;  %v1780_v54 = vadd.f32 %v1779_v44, %v1778_v30  ;;  %2996 = vmatpush3.msra.mxu1 %v310_v22  ;;  %v332_v6 = vld [vmem:[%s3718_s2 + $0x340] sm:$0xff]  ;;  %v327_v38 = vld [vmem:[%s3718_s2 + $0x318] sm:$0xff] }
 0x769   : > { %v1795_v52 = vrot.slane %v1794_v46, 2  ;;  %v1836_v53 = vsel %vm1835_vm4, %v1750_v40, %v1834_v10  ;;  %v1791_v55 = vrot.slane %v1790_v45, 1  ;;  %v1803_v57 = vrot.slane %v1802_v49, 1  ;;  %2997 = vmatprep.subr.mxu1 %v309_v23  ;;  %v326_v40 = vld [vmem:[%s3718_s2 + $0x310] sm:$0xff] }
 0x76a   : > { %v1838_v3 = vsel %vm1837_vm6, %v1756_v50, %v1836_v53  ;;  %v1841_v58 = vsel %vm1829_vm0, %v1780_v54, %v1840_v39  ;;  %2998 = vmatpush3.msra.mxu1 %v309_v23  ;;  %v1807_v25 = vsub.s32 4, %v3296_v17  ;;  %v1931_v19 = vsub.s32 5, %v3296_v17 }
 0x76b   : > { %v1796_v56 = vadd.f32 %v1795_v52, %v1794_v46  ;;  %2966 = vmatprep.mubr.f32.mxu0 %v1838_v3  ;;  %v1842_v60 = vsel %vm1831_vm1, %v1786_v51, %v1841_v58  ;;  %v1792_v12 = vadd.f32 %v1791_v55, %v1790_v45  ;;  %v1804_v14 = vadd.f32 %v1803_v57, %v1802_v49 }
 0x76c   : > { %2999 = vmatprep.subr.mxu1 %v308_v24  ;;  %v1808_v28 = vrot.slane %v3594_v2, %v1807_v25  ;;  %v1932_v41 = vrot.slane %v3594_v2, %v1931_v19  ;;  %v2016_v48 = vsub.s32 6, %v3296_v17 }
 0x76d   : > { %v1797_v59 = vrot.slane %v1796_v56, 1  ;;  %v1843_v15 = vsel %vm1833_vm3, %v1792_v12, %v1842_v60  ;;  %3000 = vmatpush3.msra.mxu1 %v308_v24 }
 0x76e   : > { %v2017_v49 = vrot.slane %v3594_v2, %v2016_v48 }
 0x76f   : > { %v1798_v13 = vadd.f32 %v1797_v59, %v1796_v56 }
 0x771   : > { %v1844_v16 = vsel %vm1835_vm4, %v1798_v13, %v1843_v15 }
 0x772   : > { %v1845_v18 = vsel %vm1837_vm6, %v1804_v14, %v1844_v16 }
 0x773   : > { %2967 = vmatmul.mubr.f32.vlgmr.msra.gmra.mxu0 %v1845_v18 }
 0x774   : > { %3005 = vmatpush3.msra.mxu0 %v339_v32 }
 0x775   : > { %3006 = vmatprep.subr.mxu0 %v338_v61 }
 0x776   : > { %3007 = vmatpush3.msra.mxu0 %v338_v61 }
 0x777   : > { %3008 = vmatprep.subr.mxu0 %v337_v62 }
 0x778   : > { %3009 = vmatpush3.msra.mxu0 %v337_v62 }
 0x779   : > { %3010 = vmatprep.subr.mxu0 %v336_v63 }
 0x77a   : > { %3011 = vmatpush3.msra.mxu0 %v336_v63 }
 0x77b   : > { %3012 = vmatprep.subr.mxu0 %v335_v0 }
 0x77c   : > { %3013 = vmatpush3.msra.mxu0 %v335_v0 }
 0x77d   : > { %3014 = vmatprep.subr.mxu0 %v334_v1 }
 0x77e   : > { %3015 = vmatpush3.msra.mxu0 %v334_v1 }
 0x77f   : > { %3016 = vmatprep.subr.mxu0 %v333_v5 }
 0x780   : > { %3017 = vmatpush3.msra.mxu0 %v333_v5 }
 0x781   : > { %3018 = vmatprep.subr.mxu0 %v332_v6 }
 0x782   : > { %3019 = vmatpush3.msra.mxu0 %v332_v6 }
 0x783   : > { %3020 = vmatprep.subr.mxu0 %v331_v7 }
 0x784   : > { %3021 = vmatpush3.msra.mxu0 %v331_v7 }
 0x785   : > { %3022 = vmatprep.subr.mxu0 %v330_v8 }
 0x786   : > { %3023 = vmatpush3.msra.mxu0 %v330_v8 }
 0x787   : > { %3024 = vmatprep.subr.mxu0 %v329_v9 }
 0x788   : > { %3025 = vmatpush3.msra.mxu0 %v329_v9 }
 0x789   : > { %3026 = vmatprep.subr.mxu0 %v328_v11 }
 0x78a   : > { %3027 = vmatpush3.msra.mxu0 %v328_v11 }
 0x78b   : > { %3028 = vmatprep.subr.mxu0 %v327_v38 }
 0x78c   : > { %3029 = vmatpush3.msra.mxu0 %v327_v38 }
 0x78d   : > { %3030 = vmatprep.subr.mxu0 %v326_v40 }
 0x78e   : > { %3031 = vmatpush3.msra.mxu0 %v326_v40 }
 0x78f   : > { %3032 = vmatprep.subr.mxu0 %v325_v4 }
 0x790   : > { %3033 = vmatpush3.msra.mxu0 %v325_v4 }
 0x791   : > { %3034 = vmatprep.subr.mxu0 %v324_v27 }
 0x792   : > { %3035 = vmatpush3.msra.mxu0 %v324_v27 }
 0x833   : > { %v2968_v29 = vpop.f32.mrf.mxu0 }
 0x834   : > { %v1920_v30 = vadd.f32 %v2968_v29, %v1808_v28 }
 0x835   : > { %v1914_v31 = vpop.f32.mrf.mxu0 }
 0x836   : > { %v1915_v33 = vadd.f32 %v1914_v31, %v1808_v28  ;;  %v1926_v34 = vmul.f32 0.01, %v1920_v30  ;;  %vm1924_vm7 = vcmp.gt.f32.partialorder %v1920_v30, 0.0 }
 0x838   : > { %v1925_v35 = vmul.f32 0.01, %v1915_v33  ;;  %vm1923_vm8 = vcmp.gt.f32.partialorder %v1915_v33, 0.0  ;;  %v1928_v37 = vsel %vm1924_vm7, %v1920_v30, %v1926_v34 }
 0x83a   : > { %v1927_v36 = vsel %vm1923_vm8, %v1915_v33, %v1925_v35 }
 0x83b   : > { %3001 = vmatprep.mubr.f32.mxu1 %v1927_v36 }
 0x83c   : > { %3002 = vmatmul.mubr.f32.vlgmr.msra.gmra.mxu1 %v1928_v37 }
 0x8fc   : > { %v3003_v20 = vpop.f32.mrf.mxu1 }
 0x8fd   : > { %v2005_v42 = vadd.f32 %v3003_v20, %v1932_v41 }
 0x8fe   : > { %v1999_v43 = vpop.f32.mrf.mxu1 }
 0x8ff   : > { %v2000_v44 = vadd.f32 %v1999_v43, %v1932_v41  ;;  %v2011_v45 = vmul.f32 0.01, %v2005_v42  ;;  %vm2009_vm9 = vcmp.gt.f32.partialorder %v2005_v42, 0.0 }
 0x901   : > { %v2010_v26 = vmul.f32 0.01, %v2000_v44  ;;  %vm2008_vm10 = vcmp.gt.f32.partialorder %v2000_v44, 0.0  ;;  %v2013_v47 = vsel %vm2009_vm9, %v2005_v42, %v2011_v45 }
 0x903   : > { %v2012_v46 = vsel %vm2008_vm10, %v2000_v44, %v2010_v26 }
 0x904   : > { %3036 = vmatprep.mubr.f32.mxu0 %v2012_v46 }
 0x905   : > { %3037 = vmatmul.mubr.f32.vlgmr.msra.gmra.mxu0 %v2013_v47 }
 0x9c5   : > { %v3038_v50 = vpop.f32.mrf.mxu0 }
 0x9c6   : > { %v2090_v51 = vadd.f32 %v3038_v50, %v2017_v49 }
 0x9c7   : > { %v2084_v10 = vpop.f32.mrf.mxu0 }
 0x9c8   : > { %v2085_v39 = vadd.f32 %v2084_v10, %v2017_v49  ;;  %2094 = vst [vmem:[%s194_s18 + $0x8] sm:$0xff] %v2090_v51 }
 0x9ca   : > { %2093 = vst [vmem:[%s194_s18] sm:$0xff] %v2085_v39 }
 0x9cb PF: > { %s13_s12 = sadd.s32 1, %s3070_s12  }
 0x9cc   : > { %p10_p5 = scmp.ge.s32.totalorder %s13_s12, 4  }
 0x9ce   :  { %12 = sbr.rel (!%p10_p5) target bundleno = 1 (0x1), region = 65 }

</bundles_post_ra>
